<compile_context>
chip_gen: v5e
topology: v5e:2x2
jax: 0.10.0
libtpu: 0.0.40
codegen_flags: <defaults>
</compile_context>

<pallas_src>
import functools
import math

import jax
import jax.numpy as jnp
from jax.experimental import pallas as pl
from jax.experimental.pallas import tpu as pltpu


def _layer_norm(v, gamma, beta, eps=1e-5):
    # two-pass variance (better conditioned than E[x^2] - mean^2)
    mu = jnp.mean(v, axis=-1, keepdims=True)
    xc = v - mu
    var = jnp.mean(xc * xc, axis=-1, keepdims=True)
    return xc * jax.lax.rsqrt(var + eps) * gamma + beta


def _encoder_kernel(num_heads,
                    x_ref, bias_ref,
                    wqkv_ref, bqkv_ref, wo_ref, bo_ref,
                    g1_ref, be1_ref, w1_ref, bf1_ref,
                    w2_ref, bf2_ref, g2_ref, be2_ref,
                    out_ref, x_acc_ref):
    l = pl.program_id(1)
    num_layers = pl.num_programs(1)

    Bt, S, D = x_ref.shape
    H = num_heads
    dh = D // H

    # Load the batch-block activation once (layer 0); it stays VMEM-resident
    # across the layer axis in the f32 scratch accumulator.
    @pl.when(l == 0)
    def _():
        x_acc_ref[...] = x_ref[...].reshape(Bt * S, D).astype(jnp.float32)

    x = x_acc_ref[...]                                   # (Bt*S, D) f32

    # ---- fused QKV projection (scale 1/sqrt(dh) folded into Wq/bq at init) --
    qkv = jnp.dot(x.astype(jnp.bfloat16), wqkv_ref[0],
                  preferred_element_type=jnp.float32) + bqkv_ref[0]  # (Bt*S, 3D)
    qkv = qkv.astype(jnp.bfloat16)

    # ---- attention (per batch row; score/context matmuls carry no weights) --
    ctx_rows = []
    for b in range(Bt):                                  # static, small
        rowsT = qkv[b * S:(b + 1) * S, :].T              # (3D, S) bf16 (cast-then-T)
        hsd = jnp.swapaxes(rowsT.reshape(3 * H, dh, S), 1, 2)   # (3H, S, dh)
        qh = hsd[0:H]                                    # (H, S, dh)
        kh = hsd[H:2 * H]
        vh = hsd[2 * H:3 * H]

        s = jnp.einsum('hqd,hkd->hqk', qh, kh,
                       preferred_element_type=jnp.float32)       # (H, S, S)
        s = s + bias_ref[b][None, :, :]                  # key-padding bias
        s = s - jnp.max(s, axis=-1, keepdims=True)
        p = jnp.exp(s)
        p = p * pl.reciprocal(jnp.sum(p, axis=-1, keepdims=True), approx=True)

        ctx = jnp.einsum('hqk,hkd->hqd', p.astype(jnp.bfloat16), vh,
                         preferred_element_type=jnp.float32)     # (H, S, dh)
        ctxT = jnp.swapaxes(ctx.astype(jnp.bfloat16), 1, 2).reshape(D, S)
        ctx_rows.append(ctxT.T)                          # (S, D) bf16 head-major

    ctx2d = jnp.concatenate(ctx_rows, axis=0)            # (Bt*S, D) bf16

    # ---- output projection: single contraction over D = H*dh ----------------
    attn = jnp.dot(ctx2d, wo_ref[0],
                   preferred_element_type=jnp.float32) + bo_ref[0]

    y = _layer_norm(x + attn, g1_ref[0], be1_ref[0])

    # ---- position-wise feed-forward -----------------------------------------
    h1 = jnp.dot(y.astype(jnp.bfloat16), w1_ref[0],
                 preferred_element_type=jnp.float32) + bf1_ref[0]
    h1 = jnp.maximum(h1, 0.0)
    z = jnp.dot(h1.astype(jnp.bfloat16), w2_ref[0],
                preferred_element_type=jnp.float32) + bf2_ref[0]

    out = _layer_norm(y + z, g2_ref[0], be2_ref[0])
    x_acc_ref[...] = out                                 # carry to next layer

    @pl.when(l == num_layers - 1)
    def _():
        out_ref[...] = out.reshape(Bt, S, D).astype(out_ref.dtype)


def _largest_divisor_up_to(n, cap):
    d = 1
    for c in range(1, min(n, cap) + 1):
        if n % c == 0:
            d = c
    return d


def encoder_forward(padding_mask, src, params, num_heads, *,
                    block_b=None, out_dtype=jnp.float32):
    """Encoder.forward: all EncoderLayers fused into one pallas_call.

    block_b rows are processed per grid step so layer weights are fetched once
    per batch-block instead of once per batch element.  out_dtype=jnp.bfloat16
    halves the only activation writeback if the consumer accepts it.
    """
    B, S, D = src.shape
    L = params["wqkv"].shape[0]

    if block_b is None:
        # whole batch at small shapes; cap keeps scratch/intermediates bounded
        block_b = _largest_divisor_up_to(B, 8)
    assert B % block_b == 0, "block_b must divide the batch size"

    # key-padding mask (1 = padded) -> additive bias broadcast over queries
    mask_bias = (padding_mask.astype(jnp.float32) * -1e9)[:, None, :]   # (B,1,S)

    weight_order = ["wqkv", "bqkv", "wo", "bo", "g1", "be1",
                    "w1", "bf1", "w2", "bf2", "g2", "be2"]
    weights = [params[name] for name in weight_order]

    def w_index(i, l):            # all weights are (L, ...) -> layer-indexed
        return (l, 0, 0)

    in_specs = [
        pl.BlockSpec((block_b, S, D), lambda i, l: (i, 0, 0)),   # src per block
        pl.BlockSpec((block_b, 1, S), lambda i, l: (i, 0, 0)),   # bias per block
    ] + [pl.BlockSpec((1,) + w.shape[1:], w_index) for w in weights]

    kernel = functools.partial(_encoder_kernel, num_heads)

    return pl.pallas_call(
        kernel,
        out_shape=jax.ShapeDtypeStruct((B, S, D), out_dtype),
        grid=(B // block_b, L),                                  # layer axis last
        in_specs=in_specs,
        out_specs=pl.BlockSpec((block_b, S, D), lambda i, l: (i, 0, 0)),
        scratch_shapes=[pltpu.VMEM((block_b * S, D), jnp.float32)],
        compiler_params=pltpu.CompilerParams(
            dimension_semantics=("parallel", "arbitrary"),
            # explicit scoped-VMEM limit (>= v5e's 16 MiB default, safe on all gens)
            vmem_limit_bytes=32 * 1024 * 1024),
    )(src, mask_bias, *weights)


def init_params(key, num_layers, num_heads, d_model, d_ffn):
    L, H, D, F = num_layers, num_heads, d_model, d_ffn
    dh = D // H
    ks = jax.random.split(key, 6)
    scale = 0.02
    wq = scale * jax.random.normal(ks[0], (L, D, D), jnp.float32)
    wk = scale * jax.random.normal(ks[1], (L, D, D), jnp.float32)
    wv = scale * jax.random.normal(ks[2], (L, D, D), jnp.float32)
    wo = scale * jax.random.normal(ks[3], (L, D, D), jnp.float32)
    w1 = scale * jax.random.normal(ks[4], (L, D, F), jnp.float32)
    w2 = scale * jax.random.normal(ks[5], (L, F, D), jnp.float32)

    # fold the attention scale into the query projection (one-time O(D^2))
    wq = wq / math.sqrt(dh)
    wqkv = jnp.concatenate([wq, wk, wv], axis=2)        # (L, D, 3D), head-major cols

    return {
        "wqkv": wqkv.astype(jnp.bfloat16),
        "bqkv": jnp.zeros((L, 1, 3 * D), jnp.float32),  # [bq*scale | bk | bv]
        "wo": wo.astype(jnp.bfloat16),                  # rows = head-major concat
        "bo": jnp.zeros((L, 1, D), jnp.float32),
        "g1": jnp.ones((L, 1, D), jnp.float32),
        "be1": jnp.zeros((L, 1, D), jnp.float32),
        "w1": w1.astype(jnp.bfloat16),
        "bf1": jnp.zeros((L, 1, F), jnp.float32),
        "w2": w2.astype(jnp.bfloat16),
        "bf2": jnp.zeros((L, 1, D), jnp.float32),
        "g2": jnp.ones((L, 1, D), jnp.float32),
        "be2": jnp.zeros((L, 1, D), jnp.float32),
    }


if __name__ == "__main__":
    num_layers = 2
    num_heads = 4
    d_model = 32
    d_ffn = 64
    B, S = 2, 8

    key = jax.random.PRNGKey(0)
    k_src, k_par = jax.random.split(key)

    src = jax.random.normal(k_src, (B, S, d_model), jnp.float32)
    # padding_mask: 1 = padded key position (ignored in attention)
    padding_mask = jnp.zeros((B, S), jnp.int32).at[1, 6:].set(1)

    params = init_params(k_par, num_layers, num_heads, d_model, d_ffn)

    out = encoder_forward(padding_mask, src, params, num_heads)
    out = jax.block_until_ready(out)

    assert out.shape == (B, S, d_model)
    assert jnp.all(jnp.isfinite(out))
    print("KERNEL_OK")
</pallas_src>

<mosaic_0001>
module attributes {stable_mosaic.version = 11 : i64} {
  func.func @_encoder_kernel(%arg0: i32, %arg1: i32, %arg2: memref<2x8x32xf32, #tpu.memory_space<vmem>>, %arg3: memref<2x1x8xf32, #tpu.memory_space<vmem>>, %arg4: memref<1x32x96xbf16, #tpu.memory_space<vmem>>, %arg5: memref<1x1x96xf32, #tpu.memory_space<vmem>>, %arg6: memref<1x32x32xbf16, #tpu.memory_space<vmem>>, %arg7: memref<1x1x32xf32, #tpu.memory_space<vmem>>, %arg8: memref<1x1x32xf32, #tpu.memory_space<vmem>>, %arg9: memref<1x1x32xf32, #tpu.memory_space<vmem>>, %arg10: memref<1x32x64xbf16, #tpu.memory_space<vmem>>, %arg11: memref<1x1x64xf32, #tpu.memory_space<vmem>>, %arg12: memref<1x64x32xbf16, #tpu.memory_space<vmem>>, %arg13: memref<1x1x32xf32, #tpu.memory_space<vmem>>, %arg14: memref<1x1x32xf32, #tpu.memory_space<vmem>>, %arg15: memref<1x1x32xf32, #tpu.memory_space<vmem>>, %arg16: memref<2x8x32xf32, #tpu.memory_space<vmem>>, %arg17: memref<16x32xf32, #tpu.memory_space<vmem>>) attributes {dimension_semantics = [#tpu.dimension_semantics<parallel>, #tpu.dimension_semantics<arbitrary>], iteration_bounds = array<i64: 1, 2>, scalar_prefetch = 0 : i64, scratch_operands = 1 : i64, tpu.core_type = #tpu.core_type<tc>, window_params = [{transform_indices = @transform_0, window_bounds = array<i64: 2, 8, 32>}, {transform_indices = @transform_1, window_bounds = array<i64: 2, 1, 8>}, {transform_indices = @transform_2, window_bounds = array<i64: 1, 32, 96>}, {transform_indices = @transform_3, window_bounds = array<i64: 1, 1, 96>}, {transform_indices = @transform_4, window_bounds = array<i64: 1, 32, 32>}, {transform_indices = @transform_5, window_bounds = array<i64: 1, 1, 32>}, {transform_indices = @transform_6, window_bounds = array<i64: 1, 1, 32>}, {transform_indices = @transform_7, window_bounds = array<i64: 1, 1, 32>}, {transform_indices = @transform_8, window_bounds = array<i64: 1, 32, 64>}, {transform_indices = @transform_9, window_bounds = array<i64: 1, 1, 64>}, {transform_indices = @transform_10, window_bounds = array<i64: 1, 64, 32>}, {transform_indices = @transform_11, window_bounds = array<i64: 1, 1, 32>}, {transform_indices = @transform_12, window_bounds = array<i64: 1, 1, 32>}, {transform_indices = @transform_13, window_bounds = array<i64: 1, 1, 32>}, {transform_indices = @transform_14, window_bounds = array<i64: 2, 8, 32>}]} {
    %c0_i32 = arith.constant 0 : i32
    %0 = arith.cmpi eq, %arg1, %c0_i32 : i32
    %1 = arith.extui %0 : i1 to i32
    %c0_i32_0 = arith.constant 0 : i32
    %2 = arith.cmpi ne, %1, %c0_i32_0 : i32
    scf.if %2 {
      %c0_68 = arith.constant 0 : index
      %c0_69 = arith.constant 0 : index
      %c0_70 = arith.constant 0 : index
      %151 = vector.load %arg2[%c0_68, %c0_69, %c0_70] : memref<2x8x32xf32, #tpu.memory_space<vmem>>, vector<2x8x32xf32>
      %152 = vector.shape_cast %151 : vector<2x8x32xf32> to vector<16x32xf32>
      %c0_71 = arith.constant 0 : index
      %c0_72 = arith.constant 0 : index
      %153 = vector.load %arg17[%c0_71, %c0_72] : memref<16x32xf32, #tpu.memory_space<vmem>>, vector<16x32xf32>
      tpu.vector_store %arg17[%c0_71, %c0_72], %152 {strides = array<i32>} : memref<16x32xf32, #tpu.memory_space<vmem>>, vector<16x32xf32>,
    } else {
    }
    %c0 = arith.constant 0 : index
    %c0_1 = arith.constant 0 : index
    %3 = vector.load %arg17[%c0, %c0_1] : memref<16x32xf32, #tpu.memory_space<vmem>>, vector<16x32xf32>
    %4 = arith.truncf %3 : vector<16x32xf32> to vector<16x32xbf16>
    %c0_2 = arith.constant 0 : index
    %c0_3 = arith.constant 0 : index
    %c0_4 = arith.constant 0 : index
    %5 = vector.load %arg4[%c0_2, %c0_3, %c0_4] : memref<1x32x96xbf16, #tpu.memory_space<vmem>>, vector<1x32x96xbf16>
    %6 = vector.shape_cast %5 : vector<1x32x96xbf16> to vector<32x96xbf16>
    %cst = arith.constant dense<0.000000e+00> : vector<16x96xf32>
    %7 = tpu.matmul %4, %6, %cst {dimension_numbers = #tpu.dot_dimension_numbers<[1], [0], [0], [1], [0, 0, 1, 1], [], []>} : vector<16x32xbf16>, vector<32x96xbf16>, vector<16x96xf32> -> vector<16x96xf32>
    %c0_5 = arith.constant 0 : index
    %c0_6 = arith.constant 0 : index
    %c0_7 = arith.constant 0 : index
    %8 = vector.load %arg5[%c0_5, %c0_6, %c0_7] : memref<1x1x96xf32, #tpu.memory_space<vmem>>, vector<1x1x96xf32>
    %9 = vector.shape_cast %8 : vector<1x1x96xf32> to vector<1x96xf32>
    %10 = vector.broadcast %9 : vector<1x96xf32> to vector<16x96xf32>
    %11 = arith.addf %7, %10 : vector<16x96xf32>
    %12 = arith.truncf %11 : vector<16x96xf32> to vector<16x96xbf16>
    %13 = vector.extract_strided_slice %12 {offsets = [0, 0], sizes = [8, 96], strides = [1, 1]} : vector<16x96xbf16> to vector<8x96xbf16>
    %14 = tpu.transpose %13, [1, 0] : vector<8x96xbf16> -> vector<96x8xbf16>
    %15 = vector.shape_cast %14 : vector<96x8xbf16> to vector<12x8x8xbf16>
    %16 = tpu.transpose %15, [0, 2, 1] : vector<12x8x8xbf16> -> vector<12x8x8xbf16>
    %17 = vector.extract_strided_slice %16 {offsets = [0, 0, 0], sizes = [4, 8, 8], strides = [1, 1, 1]} : vector<12x8x8xbf16> to vector<4x8x8xbf16>
    %18 = vector.extract_strided_slice %16 {offsets = [4, 0, 0], sizes = [4, 8, 8], strides = [1, 1, 1]} : vector<12x8x8xbf16> to vector<4x8x8xbf16>
    %19 = vector.extract_strided_slice %16 {offsets = [8, 0, 0], sizes = [4, 8, 8], strides = [1, 1, 1]} : vector<12x8x8xbf16> to vector<4x8x8xbf16>
    "tpu.trace_start"() <{level = 10 : i32, message = "hqd,hkd->hqk"}> : () -> ()
    %cst_8 = arith.constant dense<0.000000e+00> : vector<4x8x8xf32>
    %20 = tpu.matmul %17, %18, %cst_8 {dimension_numbers = #tpu.dot_dimension_numbers<[2], [2], [1], [1], [0, 0, 0, 1, 1, 1], [0], [0]>} : vector<4x8x8xbf16>, vector<4x8x8xbf16>, vector<4x8x8xf32> -> vector<4x8x8xf32>
    "tpu.trace_stop"() : () -> ()
    %c0_9 = arith.constant 0 : index
    %c0_10 = arith.constant 0 : index
    %c0_11 = arith.constant 0 : index
    %21 = vector.load %arg3[%c0_9, %c0_10, %c0_11] : memref<2x1x8xf32, #tpu.memory_space<vmem>>, vector<1x1x8xf32>
    %22 = vector.shape_cast %21 : vector<1x1x8xf32> to vector<1x8xf32>
    %23 = vector.shape_cast %22 : vector<1x8xf32> to vector<1x1x8xf32>
    %24 = vector.broadcast %23 : vector<1x1x8xf32> to vector<4x8x8xf32>
    %25 = arith.addf %20, %24 : vector<4x8x8xf32>
    %cst_12 = arith.constant dense<0xFF800000> : vector<4x8xf32>
    %26 = vector.multi_reduction <maximumf>, %25, %cst_12 [2] : vector<4x8x8xf32> to vector<4x8xf32>
    %27 = vector.shape_cast %26 : vector<4x8xf32> to vector<4x8x1xf32>
    %28 = vector.broadcast %27 : vector<4x8x1xf32> to vector<4x8x8xf32>
    %29 = arith.subf %25, %28 : vector<4x8x8xf32>
    %30 = math.exp %29 : vector<4x8x8xf32>
    %cst_13 = arith.constant dense<0.000000e+00> : vector<4x8xf32>
    %31 = vector.multi_reduction <add>, %30, %cst_13 [2] : vector<4x8x8xf32> to vector<4x8xf32>
    %32 = vector.shape_cast %31 : vector<4x8xf32> to vector<4x8x1xf32>
    %33 = tpu.reciprocal %32 {approx = true} : vector<4x8x1xf32> -> vector<4x8x1xf32>
    %34 = vector.broadcast %33 : vector<4x8x1xf32> to vector<4x8x8xf32>
    %35 = arith.mulf %30, %34 : vector<4x8x8xf32>
    %36 = arith.truncf %35 : vector<4x8x8xf32> to vector<4x8x8xbf16>
    "tpu.trace_start"() <{level = 10 : i32, message = "hqk,hkd->hqd"}> : () -> ()
    %cst_14 = arith.constant dense<0.000000e+00> : vector<4x8x8xf32>
    %37 = tpu.matmul %36, %19, %cst_14 {dimension_numbers = #tpu.dot_dimension_numbers<[2], [1], [1], [2], [0, 0, 0, 1, 1, 2], [0], [0]>} : vector<4x8x8xbf16>, vector<4x8x8xbf16>, vector<4x8x8xf32> -> vector<4x8x8xf32>
    "tpu.trace_stop"() : () -> ()
    %38 = arith.truncf %37 : vector<4x8x8xf32> to vector<4x8x8xbf16>
    %39 = tpu.transpose %38, [0, 2, 1] : vector<4x8x8xbf16> -> vector<4x8x8xbf16>
    %40 = vector.shape_cast %39 : vector<4x8x8xbf16> to vector<32x8xbf16>
    %41 = tpu.transpose %40, [1, 0] : vector<32x8xbf16> -> vector<8x32xbf16>
    %42 = vector.extract_strided_slice %12 {offsets = [8, 0], sizes = [8, 96], strides = [1, 1]} : vector<16x96xbf16> to vector<8x96xbf16>
    %43 = tpu.transpose %42, [1, 0] : vector<8x96xbf16> -> vector<96x8xbf16>
    %44 = vector.shape_cast %43 : vector<96x8xbf16> to vector<12x8x8xbf16>
    %45 = tpu.transpose %44, [0, 2, 1] : vector<12x8x8xbf16> -> vector<12x8x8xbf16>
    %46 = vector.extract_strided_slice %45 {offsets = [0, 0, 0], sizes = [4, 8, 8], strides = [1, 1, 1]} : vector<12x8x8xbf16> to vector<4x8x8xbf16>
    %47 = vector.extract_strided_slice %45 {offsets = [4, 0, 0], sizes = [4, 8, 8], strides = [1, 1, 1]} : vector<12x8x8xbf16> to vector<4x8x8xbf16>
    %48 = vector.extract_strided_slice %45 {offsets = [8, 0, 0], sizes = [4, 8, 8], strides = [1, 1, 1]} : vector<12x8x8xbf16> to vector<4x8x8xbf16>
    "tpu.trace_start"() <{level = 10 : i32, message = "hqd,hkd->hqk"}> : () -> ()
    %cst_15 = arith.constant dense<0.000000e+00> : vector<4x8x8xf32>
    %49 = tpu.matmul %46, %47, %cst_15 {dimension_numbers = #tpu.dot_dimension_numbers<[2], [2], [1], [1], [0, 0, 0, 1, 1, 1], [0], [0]>} : vector<4x8x8xbf16>, vector<4x8x8xbf16>, vector<4x8x8xf32> -> vector<4x8x8xf32>
    "tpu.trace_stop"() : () -> ()
    %c1 = arith.constant 1 : index
    %c0_16 = arith.constant 0 : index
    %c0_17 = arith.constant 0 : index
    %50 = vector.load %arg3[%c1, %c0_16, %c0_17] : memref<2x1x8xf32, #tpu.memory_space<vmem>>, vector<1x1x8xf32>
    %51 = vector.shape_cast %50 : vector<1x1x8xf32> to vector<1x8xf32>
    %52 = vector.shape_cast %51 : vector<1x8xf32> to vector<1x1x8xf32>
    %53 = vector.broadcast %52 : vector<1x1x8xf32> to vector<4x8x8xf32>
    %54 = arith.addf %49, %53 : vector<4x8x8xf32>
    %cst_18 = arith.constant dense<0xFF800000> : vector<4x8xf32>
    %55 = vector.multi_reduction <maximumf>, %54, %cst_18 [2] : vector<4x8x8xf32> to vector<4x8xf32>
    %56 = vector.shape_cast %55 : vector<4x8xf32> to vector<4x8x1xf32>
    %57 = vector.broadcast %56 : vector<4x8x1xf32> to vector<4x8x8xf32>
    %58 = arith.subf %54, %57 : vector<4x8x8xf32>
    %59 = math.exp %58 : vector<4x8x8xf32>
    %cst_19 = arith.constant dense<0.000000e+00> : vector<4x8xf32>
    %60 = vector.multi_reduction <add>, %59, %cst_19 [2] : vector<4x8x8xf32> to vector<4x8xf32>
    %61 = vector.shape_cast %60 : vector<4x8xf32> to vector<4x8x1xf32>
    %62 = tpu.reciprocal %61 {approx = true} : vector<4x8x1xf32> -> vector<4x8x1xf32>
    %63 = vector.broadcast %62 : vector<4x8x1xf32> to vector<4x8x8xf32>
    %64 = arith.mulf %59, %63 : vector<4x8x8xf32>
    %65 = arith.truncf %64 : vector<4x8x8xf32> to vector<4x8x8xbf16>
    "tpu.trace_start"() <{level = 10 : i32, message = "hqk,hkd->hqd"}> : () -> ()
    %cst_20 = arith.constant dense<0.000000e+00> : vector<4x8x8xf32>
    %66 = tpu.matmul %65, %48, %cst_20 {dimension_numbers = #tpu.dot_dimension_numbers<[2], [1], [1], [2], [0, 0, 0, 1, 1, 2], [0], [0]>} : vector<4x8x8xbf16>, vector<4x8x8xbf16>, vector<4x8x8xf32> -> vector<4x8x8xf32>
    "tpu.trace_stop"() : () -> ()
    %67 = arith.truncf %66 : vector<4x8x8xf32> to vector<4x8x8xbf16>
    %68 = tpu.transpose %67, [0, 2, 1] : vector<4x8x8xbf16> -> vector<4x8x8xbf16>
    %69 = vector.shape_cast %68 : vector<4x8x8xbf16> to vector<32x8xbf16>
    %70 = tpu.transpose %69, [1, 0] : vector<32x8xbf16> -> vector<8x32xbf16>
    %71 = tpu.concatenate %41, %70 in 0 : vector<8x32xbf16>, vector<8x32xbf16> -> vector<16x32xbf16>
    %c0_21 = arith.constant 0 : index
    %c0_22 = arith.constant 0 : index
    %c0_23 = arith.constant 0 : index
    %72 = vector.load %arg6[%c0_21, %c0_22, %c0_23] : memref<1x32x32xbf16, #tpu.memory_space<vmem>>, vector<1x32x32xbf16>
    %73 = vector.shape_cast %72 : vector<1x32x32xbf16> to vector<32x32xbf16>
    %cst_24 = arith.constant dense<0.000000e+00> : vector<16x32xf32>
    %74 = tpu.matmul %71, %73, %cst_24 {dimension_numbers = #tpu.dot_dimension_numbers<[1], [0], [0], [1], [0, 0, 1, 1], [], []>} : vector<16x32xbf16>, vector<32x32xbf16>, vector<16x32xf32> -> vector<16x32xf32>
    %c0_25 = arith.constant 0 : index
    %c0_26 = arith.constant 0 : index
    %c0_27 = arith.constant 0 : index
    %75 = vector.load %arg7[%c0_25, %c0_26, %c0_27] : memref<1x1x32xf32, #tpu.memory_space<vmem>>, vector<1x1x32xf32>
    %76 = vector.shape_cast %75 : vector<1x1x32xf32> to vector<1x32xf32>
    %77 = vector.broadcast %76 : vector<1x32xf32> to vector<16x32xf32>
    %78 = arith.addf %74, %77 : vector<16x32xf32>
    %79 = arith.addf %3, %78 : vector<16x32xf32>
    %c0_28 = arith.constant 0 : index
    %c0_29 = arith.constant 0 : index
    %c0_30 = arith.constant 0 : index
    %80 = vector.load %arg8[%c0_28, %c0_29, %c0_30] : memref<1x1x32xf32, #tpu.memory_space<vmem>>, vector<1x1x32xf32>
    %81 = vector.shape_cast %80 : vector<1x1x32xf32> to vector<1x32xf32>
    %c0_31 = arith.constant 0 : index
    %c0_32 = arith.constant 0 : index
    %c0_33 = arith.constant 0 : index
    %82 = vector.load %arg9[%c0_31, %c0_32, %c0_33] : memref<1x1x32xf32, #tpu.memory_space<vmem>>, vector<1x1x32xf32>
    %83 = vector.shape_cast %82 : vector<1x1x32xf32> to vector<1x32xf32>
    %cst_34 = arith.constant dense<0.000000e+00> : vector<16xf32>
    %84 = vector.multi_reduction <add>, %79, %cst_34 [1] : vector<16x32xf32> to vector<16xf32>
    %85 = vector.shape_cast %84 : vector<16xf32> to vector<16x1xf32>
    %cst_35 = arith.constant 3.200000e+01 : f32
    %86 = vector.broadcast %cst_35 : f32 to vector<16x1xf32>
    %87 = arith.divf %85, %86 : vector<16x1xf32>
    %88 = vector.broadcast %87 : vector<16x1xf32> to vector<16x32xf32>
    %89 = arith.subf %79, %88 : vector<16x32xf32>
    %90 = arith.mulf %89, %89 : vector<16x32xf32>
    %cst_36 = arith.constant dense<0.000000e+00> : vector<16xf32>
    %91 = vector.multi_reduction <add>, %90, %cst_36 [1] : vector<16x32xf32> to vector<16xf32>
    %92 = vector.shape_cast %91 : vector<16xf32> to vector<16x1xf32>
    %cst_37 = arith.constant 3.200000e+01 : f32
    %93 = vector.broadcast %cst_37 : f32 to vector<16x1xf32>
    %94 = arith.divf %92, %93 : vector<16x1xf32>
    %cst_38 = arith.constant 9.99999974E-6 : f32
    %95 = vector.broadcast %cst_38 : f32 to vector<16x1xf32>
    %96 = arith.addf %94, %95 : vector<16x1xf32>
    %97 = math.rsqrt %96 : vector<16x1xf32>
    %98 = vector.broadcast %97 : vector<16x1xf32> to vector<16x32xf32>
    %99 = arith.mulf %89, %98 : vector<16x32xf32>
    %100 = vector.broadcast %81 : vector<1x32xf32> to vector<16x32xf32>
    %101 = arith.mulf %99, %100 : vector<16x32xf32>
    %102 = vector.broadcast %83 : vector<1x32xf32> to vector<16x32xf32>
    %103 = arith.addf %101, %102 : vector<16x32xf32>
    %104 = arith.truncf %103 : vector<16x32xf32> to vector<16x32xbf16>
    %c0_39 = arith.constant 0 : index
    %c0_40 = arith.constant 0 : index
    %c0_41 = arith.constant 0 : index
    %105 = vector.load %arg10[%c0_39, %c0_40, %c0_41] : memref<1x32x64xbf16, #tpu.memory_space<vmem>>, vector<1x32x64xbf16>
    %106 = vector.shape_cast %105 : vector<1x32x64xbf16> to vector<32x64xbf16>
    %cst_42 = arith.constant dense<0.000000e+00> : vector<16x64xf32>
    %107 = tpu.matmul %104, %106, %cst_42 {dimension_numbers = #tpu.dot_dimension_numbers<[1], [0], [0], [1], [0, 0, 1, 1], [], []>} : vector<16x32xbf16>, vector<32x64xbf16>, vector<16x64xf32> -> vector<16x64xf32>
    %c0_43 = arith.constant 0 : index
    %c0_44 = arith.constant 0 : index
    %c0_45 = arith.constant 0 : index
    %108 = vector.load %arg11[%c0_43, %c0_44, %c0_45] : memref<1x1x64xf32, #tpu.memory_space<vmem>>, vector<1x1x64xf32>
    %109 = vector.shape_cast %108 : vector<1x1x64xf32> to vector<1x64xf32>
    %110 = vector.broadcast %109 : vector<1x64xf32> to vector<16x64xf32>
    %111 = arith.addf %107, %110 : vector<16x64xf32>
    %cst_46 = arith.constant 0.000000e+00 : f32
    %112 = vector.broadcast %cst_46 : f32 to vector<16x64xf32>
    %113 = arith.maximumf %111, %112 : vector<16x64xf32>
    %114 = arith.truncf %113 : vector<16x64xf32> to vector<16x64xbf16>
    %c0_47 = arith.constant 0 : index
    %c0_48 = arith.constant 0 : index
    %c0_49 = arith.constant 0 : index
    %115 = vector.load %arg12[%c0_47, %c0_48, %c0_49] : memref<1x64x32xbf16, #tpu.memory_space<vmem>>, vector<1x64x32xbf16>
    %116 = vector.shape_cast %115 : vector<1x64x32xbf16> to vector<64x32xbf16>
    %cst_50 = arith.constant dense<0.000000e+00> : vector<16x32xf32>
    %117 = tpu.matmul %114, %116, %cst_50 {dimension_numbers = #tpu.dot_dimension_numbers<[1], [0], [0], [1], [0, 0, 1, 1], [], []>} : vector<16x64xbf16>, vector<64x32xbf16>, vector<16x32xf32> -> vector<16x32xf32>
    %c0_51 = arith.constant 0 : index
    %c0_52 = arith.constant 0 : index
    %c0_53 = arith.constant 0 : index
    %118 = vector.load %arg13[%c0_51, %c0_52, %c0_53] : memref<1x1x32xf32, #tpu.memory_space<vmem>>, vector<1x1x32xf32>
    %119 = vector.shape_cast %118 : vector<1x1x32xf32> to vector<1x32xf32>
    %120 = vector.broadcast %119 : vector<1x32xf32> to vector<16x32xf32>
    %121 = arith.addf %117, %120 : vector<16x32xf32>
    %122 = arith.addf %103, %121 : vector<16x32xf32>
    %c0_54 = arith.constant 0 : index
    %c0_55 = arith.constant 0 : index
    %c0_56 = arith.constant 0 : index
    %123 = vector.load %arg14[%c0_54, %c0_55, %c0_56] : memref<1x1x32xf32, #tpu.memory_space<vmem>>, vector<1x1x32xf32>
    %124 = vector.shape_cast %123 : vector<1x1x32xf32> to vector<1x32xf32>
    %c0_57 = arith.constant 0 : index
    %c0_58 = arith.constant 0 : index
    %c0_59 = arith.constant 0 : index
    %125 = vector.load %arg15[%c0_57, %c0_58, %c0_59] : memref<1x1x32xf32, #tpu.memory_space<vmem>>, vector<1x1x32xf32>
    %126 = vector.shape_cast %125 : vector<1x1x32xf32> to vector<1x32xf32>
    %cst_60 = arith.constant dense<0.000000e+00> : vector<16xf32>
    %127 = vector.multi_reduction <add>, %122, %cst_60 [1] : vector<16x32xf32> to vector<16xf32>
    %128 = vector.shape_cast %127 : vector<16xf32> to vector<16x1xf32>
    %cst_61 = arith.constant 3.200000e+01 : f32
    %129 = vector.broadcast %cst_61 : f32 to vector<16x1xf32>
    %130 = arith.divf %128, %129 : vector<16x1xf32>
    %131 = vector.broadcast %130 : vector<16x1xf32> to vector<16x32xf32>
    %132 = arith.subf %122, %131 : vector<16x32xf32>
    %133 = arith.mulf %132, %132 : vector<16x32xf32>
    %cst_62 = arith.constant dense<0.000000e+00> : vector<16xf32>
    %134 = vector.multi_reduction <add>, %133, %cst_62 [1] : vector<16x32xf32> to vector<16xf32>
    %135 = vector.shape_cast %134 : vector<16xf32> to vector<16x1xf32>
    %cst_63 = arith.constant 3.200000e+01 : f32
    %136 = vector.broadcast %cst_63 : f32 to vector<16x1xf32>
    %137 = arith.divf %135, %136 : vector<16x1xf32>
    %cst_64 = arith.constant 9.99999974E-6 : f32
    %138 = vector.broadcast %cst_64 : f32 to vector<16x1xf32>
    %139 = arith.addf %137, %138 : vector<16x1xf32>
    %140 = math.rsqrt %139 : vector<16x1xf32>
    %141 = vector.broadcast %140 : vector<16x1xf32> to vector<16x32xf32>
    %142 = arith.mulf %132, %141 : vector<16x32xf32>
    %143 = vector.broadcast %124 : vector<1x32xf32> to vector<16x32xf32>
    %144 = arith.mulf %142, %143 : vector<16x32xf32>
    %145 = vector.broadcast %126 : vector<1x32xf32> to vector<16x32xf32>
    %146 = arith.addf %144, %145 : vector<16x32xf32>
    %c0_65 = arith.constant 0 : index
    %c0_66 = arith.constant 0 : index
    %147 = vector.load %arg17[%c0_65, %c0_66] : memref<16x32xf32, #tpu.memory_space<vmem>>, vector<16x32xf32>
    tpu.vector_store %arg17[%c0_65, %c0_66], %146 {strides = array<i32>} : memref<16x32xf32, #tpu.memory_space<vmem>>, vector<16x32xf32>,
    %c1_i32 = arith.constant 1 : i32
    %148 = arith.cmpi eq, %arg1, %c1_i32 : i32
    %149 = arith.extui %148 : i1 to i32
    %c0_i32_67 = arith.constant 0 : i32
    %150 = arith.cmpi ne, %149, %c0_i32_67 : i32
    scf.if %150 {
      %151 = vector.shape_cast %146 : vector<16x32xf32> to vector<2x8x32xf32>
      %c0_68 = arith.constant 0 : index
      %c0_69 = arith.constant 0 : index
      %c0_70 = arith.constant 0 : index
      %152 = vector.load %arg16[%c0_68, %c0_69, %c0_70] : memref<2x8x32xf32, #tpu.memory_space<vmem>>, vector<2x8x32xf32>
      tpu.vector_store %arg16[%c0_68, %c0_69, %c0_70], %151 {strides = array<i32>} : memref<2x8x32xf32, #tpu.memory_space<vmem>>, vector<2x8x32xf32>,
    } else {
    }
    return
  }
  func.func @transform_0(%arg0: i32, %arg1: i32) -> (i32, i32, i32) {
    %c0_i32 = arith.constant 0 : i32
    %c0_i32_0 = arith.constant 0 : i32
    %c0_i32_1 = arith.constant 0 : i32
    return %arg0, %c0_i32, %c0_i32_0 : i32, i32, i32
  }
  func.func @transform_1(%arg0: i32, %arg1: i32) -> (i32, i32, i32) {
    %c0_i32 = arith.constant 0 : i32
    %c0_i32_0 = arith.constant 0 : i32
    %c0_i32_1 = arith.constant 0 : i32
    return %arg0, %c0_i32, %c0_i32_0 : i32, i32, i32
  }
  func.func @transform_2(%arg0: i32, %arg1: i32) -> (i32, i32, i32) {
    %c0_i32 = arith.constant 0 : i32
    %c0_i32_0 = arith.constant 0 : i32
    %c0_i32_1 = arith.constant 0 : i32
    return %arg1, %c0_i32, %c0_i32_0 : i32, i32, i32
  }
  func.func @transform_3(%arg0: i32, %arg1: i32) -> (i32, i32, i32) {
    %c0_i32 = arith.constant 0 : i32
    %c0_i32_0 = arith.constant 0 : i32
    %c0_i32_1 = arith.constant 0 : i32
    return %arg1, %c0_i32, %c0_i32_0 : i32, i32, i32
  }
  func.func @transform_4(%arg0: i32, %arg1: i32) -> (i32, i32, i32) {
    %c0_i32 = arith.constant 0 : i32
    %c0_i32_0 = arith.constant 0 : i32
    %c0_i32_1 = arith.constant 0 : i32
    return %arg1, %c0_i32, %c0_i32_0 : i32, i32, i32
  }
  func.func @transform_5(%arg0: i32, %arg1: i32) -> (i32, i32, i32) {
    %c0_i32 = arith.constant 0 : i32
    %c0_i32_0 = arith.constant 0 : i32
    %c0_i32_1 = arith.constant 0 : i32
    return %arg1, %c0_i32, %c0_i32_0 : i32, i32, i32
  }
  func.func @transform_6(%arg0: i32, %arg1: i32) -> (i32, i32, i32) {
    %c0_i32 = arith.constant 0 : i32
    %c0_i32_0 = arith.constant 0 : i32
    %c0_i32_1 = arith.constant 0 : i32
    return %arg1, %c0_i32, %c0_i32_0 : i32, i32, i32
  }
  func.func @transform_7(%arg0: i32, %arg1: i32) -> (i32, i32, i32) {
    %c0_i32 = arith.constant 0 : i32
    %c0_i32_0 = arith.constant 0 : i32
    %c0_i32_1 = arith.constant 0 : i32
    return %arg1, %c0_i32, %c0_i32_0 : i32, i32, i32
  }
  func.func @transform_8(%arg0: i32, %arg1: i32) -> (i32, i32, i32) {
    %c0_i32 = arith.constant 0 : i32
    %c0_i32_0 = arith.constant 0 : i32
    %c0_i32_1 = arith.constant 0 : i32
    return %arg1, %c0_i32, %c0_i32_0 : i32, i32, i32
  }
  func.func @transform_9(%arg0: i32, %arg1: i32) -> (i32, i32, i32) {
    %c0_i32 = arith.constant 0 : i32
    %c0_i32_0 = arith.constant 0 : i32
    %c0_i32_1 = arith.constant 0 : i32
    return %arg1, %c0_i32, %c0_i32_0 : i32, i32, i32
  }
  func.func @transform_10(%arg0: i32, %arg1: i32) -> (i32, i32, i32) {
    %c0_i32 = arith.constant 0 : i32
    %c0_i32_0 = arith.constant 0 : i32
    %c0_i32_1 = arith.constant 0 : i32
    return %arg1, %c0_i32, %c0_i32_0 : i32, i32, i32
  }
  func.func @transform_11(%arg0: i32, %arg1: i32) -> (i32, i32, i32) {
    %c0_i32 = arith.constant 0 : i32
    %c0_i32_0 = arith.constant 0 : i32
    %c0_i32_1 = arith.constant 0 : i32
    return %arg1, %c0_i32, %c0_i32_0 : i32, i32, i32
  }
  func.func @transform_12(%arg0: i32, %arg1: i32) -> (i32, i32, i32) {
    %c0_i32 = arith.constant 0 : i32
    %c0_i32_0 = arith.constant 0 : i32
    %c0_i32_1 = arith.constant 0 : i32
    return %arg1, %c0_i32, %c0_i32_0 : i32, i32, i32
  }
  func.func @transform_13(%arg0: i32, %arg1: i32) -> (i32, i32, i32) {
    %c0_i32 = arith.constant 0 : i32
    %c0_i32_0 = arith.constant 0 : i32
    %c0_i32_1 = arith.constant 0 : i32
    return %arg1, %c0_i32, %c0_i32_0 : i32, i32, i32
  }
  func.func @transform_14(%arg0: i32, %arg1: i32) -> (i32, i32, i32) {
    %c0_i32 = arith.constant 0 : i32
    %c0_i32_0 = arith.constant 0 : i32
    %c0_i32_1 = arith.constant 0 : i32
    return %arg0, %c0_i32, %c0_i32_0 : i32, i32, i32
  }
}

</mosaic_0001>

<bundles_post_ra>
// kernel: tpu_custom_call.1
= control target key start
LH: loop header
LB: loop body
LE: loop exit
PB: predicated region body
PF: predicated region fallthrough
CT: control target
= control target key end

     0   :  { %s3379_s0 = inlined_call_operand.hbm [shape: f32[2,8,32], index: 0, kind: input, shape index: {}]   ;;  %s3380_s1 = inlined_call_operand.hbm [shape: f32[2,1,8], index: 1, kind: input, shape index: {}]   ;;  %s3381_s2 = inlined_call_operand.vmem [shape: bf16[2,32,96], index: 2, kind: input, shape index: {}]   ;;  %s3382_s3 = inlined_call_operand.hbm [shape: f32[2,1,96], index: 3, kind: input, shape index: {}]   ;;  %s3383_s4 = inlined_call_operand.vmem [shape: bf16[2,32,32], index: 4, kind: input, shape index: {}]   ;;  %s3384_s5 = inlined_call_operand.vmem [shape: f32[2,1,32], index: 5, kind: input, shape index: {}]   ;;  %s3385_s6 = inlined_call_operand.vmem [shape: f32[2,1,32], index: 6, kind: input, shape index: {}]   ;;  %s3386_s7 = inlined_call_operand.hbm [shape: f32[2,1,32], index: 7, kind: input, shape index: {}]   ;;  %s3387_s8 = inlined_call_operand.vmem [shape: bf16[2,32,64], index: 8, kind: input, shape index: {}]   ;;  %s3388_s9 = inlined_call_operand.vmem [shape: f32[2,1,64], index: 9, kind: input, shape index: {}]   ;;  %s3389_s10 = inlined_call_operand.vmem [shape: bf16[2,64,32], index: 10, kind: input, shape index: {}]   ;;  %s3390_s11 = inlined_call_operand.vmem [shape: f32[2,1,32], index: 11, kind: input, shape index: {}]   ;;  %s3391_s12 = inlined_call_operand.vmem [shape: f32[2,1,32], index: 12, kind: input, shape index: {}]   ;;  %s3392_s13 = inlined_call_operand.hbm [shape: f32[2,1,32], index: 13, kind: input, shape index: {}]   ;;  %s3393_s14 = inlined_call_operand.hbm [shape: f32[2,8,32], index: 14, kind: output, shape index: {}]  }
   0x1   :  { %3397 = sst [smem:[#allocation20_spill]] %s3379_s0 }
   0x2   :  { %3398 = sst [smem:[#allocation21_spill]] %s3380_s1 }
   0x3   :  { %3399 = sst [smem:[#allocation22_spill]] %s3381_s2 }
   0x4   :  { %3400 = sst [smem:[#allocation23_spill]] %s3382_s3 }
   0x5   :  { %3401 = sst [smem:[#allocation24_spill]] %s3383_s4 }
   0x6   :  { %3402 = sst [smem:[#allocation25_spill]] %s3386_s7 }
   0x7   :  { %3403 = sst [smem:[#allocation26_spill]] %s3387_s8 }
   0x8   :  { %3404 = sst [smem:[#allocation27_spill]] %s3388_s9 }
   0x9   :  { %3405 = sst [smem:[#allocation28_spill]] %s3389_s10 }
   0xa   :  { %3406 = sst [smem:[#allocation29_spill]] %s3390_s11 }
   0xb   :  { %3407 = sst [smem:[#allocation30_spill]] %s3391_s12 }
   0xc   :  { %3408 = sst [smem:[#allocation31_spill]] %s3392_s13 }
   0xd   :  { %3409 = sst [smem:[#allocation32_spill]] %s3393_s14 }
   0xe   :  { %19 = vsyncpa [#allocation4], 0 }
   0xf   :  { %20 = vsyncpa [#allocation7], 0 }
  0x10   :  { %21 = vsyncpa [#allocation5], 0  ;;  %s3010_s29 = smov 0   ;;  %s3012_s30 = smov 0  }
  0x11   :  { %s3014_s15 = smov 0   ;;  %s3016_s16 = smov 0  }
  0x12   :  { %s3018_s17 = smov 0   ;;  %s3020_s18 = smov 0  }
  0x13 LB: > { %3410 = sst [smem:[#allocation16_spill]] %s2911_s15  ;;  %s3039_s19 = sadd.s32 4294967295, %s2923_s18   ;;  %s2923_s18 = sphi %s3020_s18, %s27_s18   ;;  %s2919_s17 = sphi %s3018_s17, %s3445_s17   ;;  %s2915_s16 = sphi %s3016_s16, %s3444_s16   ;;  %s2911_s15 = sphi %s3014_s15, %s3440_s15   ;;  %s2907_s30 = sphi %s3012_s30, %s3443_s30   ;;  %s2903_s29 = sphi %s3010_s29, %s3442_s29  }
  0x14   : > { %3411 = sst [smem:[#allocation17_spill]] %s2923_s18  ;;  %p137_p0 = scmp.ne.s32.totalorder %s2907_s30, %s2903_s29 }
  0x15   : > { %p138_p1 = scmp.eq.s32.totalorder %s3039_s19, 0  ;;  %p2392_p2 = scmp.ge.s32.totalorder %s2923_s18, 1 }
  0x16   : > { %p434_p3 = scmp.lt.s32.totalorder %s2923_s18, 3  ;;  %s3413_s0 = sld [smem:[#allocation20_spill]] }
  0x17   : > { %p3047_p4 = por %p138_p1, %p137_p0  ;;  %s2925_s25 = smov [#allocation3]  }
  0x18   : > { %p3054_p5 = pnand %p2392_p2, %p434_p3  ;;  %s450_s26 = sshll.u32 %s2925_s25, 4  ;;  %s451_s26 = int_to_ptr.vmem [resolvable:$true] %s450_s26 }
  0x19   : > { %s2926_s28 = smov 128   ;;  %s2927_s29 = smov 8  }
  0x1a   : > { %p2505_p6 = pneg %p3054_p5  ;;  %s36_s21 = sadd.s32 1, %s2919_s17 }
  0x1b   : > { %p37_p8 = scmp.ge.s32.totalorder %s36_s21, 2  ;;  %s124_s22 = sadd.s32 1, %s2911_s15 }
  0x1c   : > { %s448_s23 = sshll.u32 %s3413_s0, 4  ;;  %p3062_p7 = pnand %p2505_p6, %p138_p1  ;;  %s449_s23 = int_to_ptr.hbm [resolvable:$true] %s448_s23 }
  0x1d   : > { %p131_p9 = scmp.ne.s32.totalorder %s2911_s15, %s2907_s30  ;;  %p132_p10 = scmp.eq.s32.totalorder %s2923_s18, 0 }
  0x1e   : > { %2508 = dma.hbm_to_vmem [thread:$0]  (!%p3062_p7), %s449_s23, 256, %s451_s26, [#allocation4], %s2926_s28, %s2926_s28, %s2927_s29  }
  0x1f   : > { %s3447_s21 = smov (%p37_p8, %s36_s21), 0  ;;  %p3075_p11 = por %p132_p10, %p131_p9 }
  0x20   : > { %3416 = sst [smem:[#allocation18_spill]] %s3447_s21  ;;  %p2524_p12 = scmp.lt.s32.totalorder %s2923_s18, 2 }
  0x21   : > { %s121_s0 = ssub.s32 %s2919_s17, %s3447_s21  ;;  %s488_s14 = sand.u32 1, %s2923_s18  }
  0x22   : > { %p122_p13 = scmp.eq.s32.totalorder %s121_s0, 0  ;;  %s3084_s12 = sand.u32 1, %s2911_s15  }
  0x23   : > { %s3418_s3 = sld [smem:[#allocation23_spill]]  ;;  %s491_s10 = scalar_lea.vmem [#allocation8], %s3084_s12 }
  0x24   : > { %s3091_s29 = scalar_select %p122_p13, %s2911_s15, %s124_s22  }
  0x25   : > { %s498_s9 = sshll.u32 %s491_s10, 4  ;;  %p3096_p0 = pnand %p2524_p12, %p3075_p11  ;;  %s499_s9 = int_to_ptr.vmem [resolvable:$true] %s498_s9 }
  0x26   : > { %3419 = sst [smem:[#allocation19_spill]] %s3091_s29  ;;  %s489_s22 = scalar_lea.sflag [#allocation4], %s488_s14 }
  0x27   : > { %s3421_s7 = sld [smem:[#allocation25_spill]]  ;;  %s528_s10 = scalar_lea.vmem [#allocation9], %s3084_s12 }
  0x28   : > { %s535_s25 = sshll.u32 %s528_s10, 4  ;;  %s3422_s1 = sld [smem:[#allocation21_spill]]  ;;  %s536_s25 = int_to_ptr.vmem [resolvable:$true] %s535_s25 }
  0x29   : > { %s494_s28 = scalar_lea.hbm %s3418_s3, %s2919_s17  ;;  %s2928_s18 = smov [#allocation6]  }
  0x2a   : > { %s496_s11 = sshll.u32 %s494_s28, 4  ;;  %s466_s0 = sshll.u32 %s2928_s18, 4  ;;  %s497_s11 = int_to_ptr.hbm [resolvable:$true] %s496_s11  ;;  %s467_s0 = int_to_ptr.vmem [resolvable:$true] %s466_s0 }
  0x2b   : > { %2515 = dma.hbm_to_vmem [thread:$0]  (!%p3096_p0), %s497_s11, 16, %s499_s9, %s489_s22  }
  0x2c   : > { %s2930_s14 = smov 1   ;;  %s3423_s13 = sld [smem:[#allocation31_spill]] }
  0x2d   : > { %s531_s23 = scalar_lea.hbm %s3421_s7, %s2919_s17  ;;  %s579_s15 = scalar_lea.vmem [#allocation10], %s3084_s12 }
  0x2e   : > { %s533_s26 = sshll.u32 %s531_s23, 4  ;;  %s464_s29 = sshll.u32 %s3422_s1, 4  ;;  %s534_s26 = int_to_ptr.hbm [resolvable:$true] %s533_s26  ;;  %s465_s29 = int_to_ptr.hbm [resolvable:$true] %s464_s29 }
  0x2f   : > { %2518 = dma.hbm_to_vmem [thread:$0]  (!%p3096_p0), %s534_s26, 16, %s536_s25, %s489_s22  }
  0x30   : > { %s2929_s23 = smov 16   ;;  %s586_s8 = sshll.u32 %s579_s15, 4  ;;  %s587_s8 = int_to_ptr.vmem [resolvable:$true] %s586_s8 }
  0x31   : > { %2511 = dma.hbm_to_vmem [thread:$0]  (!%p3062_p7), %s465_s29, 32, %s467_s0, [#allocation7], %s2929_s23, %s2929_s23, %s2930_s14  }
  0x32   : > { %s582_s10 = scalar_lea.hbm %s3423_s13, %s2919_s17  ;;  %595 = sbr.rel (%p3054_p5) target bundleno = 3337 (0xd09), region = 76 }
  0x33   : > { %s584_s7 = sshll.u32 %s582_s10, 4  ;;  %s585_s7 = int_to_ptr.hbm [resolvable:$true] %s584_s7 }
  0x34   : > { %2521 = dma.hbm_to_vmem [thread:$0]  (!%p3096_p0), %s585_s7, 16, %s587_s8, %s489_s22  }
  0x37   : > { %2886 = dma.done.wait (%p138_p1), [#allocation4], 256  }
  0x38   : > { %2888 = vsyncadd (%p138_p1), [#allocation4], 4294967040 }
  0x39   : > { %2890 = dma.done.wait (%p138_p1), [#allocation7], 32  }
  0x3a   : > { %2892 = vsyncadd (%p138_p1), [#allocation7], 4294967264  ;;  %s607_s3 = sand.u32 1, %s3039_s19   ;;  %s3133_s7 = sand.u32 1, %s2907_s30  }
  0x3b   : > { %s608_s8 = scalar_lea.sflag [#allocation4], %s607_s3 }
  0x3c   : > { %2894 = dma.done.wait (%p3047_p4), %s608_s8, 48  }
  0x3d   : > { %2896 = vsyncadd (%p3047_p4), %s608_s8, 4294967248  ;;  %p713_p2 = scmp.lt.s32.totalorder %s2915_s16, 1  ;;  %s3424_s2 = sld [smem:[#allocation22_spill]] }
  0x3e   : > { %s3425_s4 = sld [smem:[#allocation24_spill]]  ;;  %s628_s11 = scalar_lea.vmem [#allocation10], %s3133_s7 }
  0x3f   : > { %s3142_s15 = scalar_select %p713_p2, %s2915_s16, 1 }
  0x40   : > { %s3426_s10 = sld [smem:[#allocation26_spill]]  ;;  %p2407_p1 = scmp.ne.s32.totalorder %s2915_s16, 0 }
  0x41   : > { %s2473_s24 = sshll.u32 %s3142_s15, 4  ;;  %s3427_s21 = sld [smem:[#allocation27_spill]] }
  0x42   : > { %s2476_s29 = sshll.u32 %s3142_s15, 5  ;;  %s3428_s1 = sld [smem:[#allocation28_spill]] }
  0x43   : > { %s717_s22 = scalar_lea.vmem %s3424_s2, %s2473_s24  ;;  %s3430_s13 = sld [smem:[#allocation30_spill]] }
  0x44   : > { %s3155_s18 = scalar_lea.vmem %s3425_s4, %s2473_s24  ;;  %s3429_s4 = sld [smem:[#allocation29_spill]] }
  0x46   : > { %s3164_s3 = scalar_lea.vmem %s3426_s10, %s2473_s24  ;;  %s619_s24 = scalar_lea.vmem [#allocation9], %s3133_s7 }
  0x47   : > { %s736_s20 = scalar_lea.vmem %s3427_s21, %s3142_s15  ;;  %753 = sbr.rel (%p2407_p1) target bundleno = 79 (0x4f), region = 100 }
  0x48   : > { %s3174_s25 = scalar_lea.vmem %s3428_s1, %s2476_s29 }
  0x49   : > { %s747_s9 = scalar_lea.vmem %s3430_s13, %s3142_s15 }
  0x4a   : > { %s744_s0 = scalar_lea.vmem %s3429_s4, %s3142_s15 }
  0x4c   : > { %v754_v0 = vld [vmem:[#allocation3] sm:$0xff]  ;;  %vm756_vm0 = vcmask 261120   ;;  %v755_v1 = vld [vmem:[#allocation3 + $0x8] sm:$0xff] }
  0x4d   : > { %757 = vst.msk [vmem:[#allocation2] sm:$0xff] %vm756_vm0, %v754_v0 }
  0x4e   : > { %758 = vst.msk [vmem:[#allocation2 + $0x8] sm:$0xff] %vm756_vm0, %v755_v1 }
  0x4f PF: > { %v2478_v2 = vld [vmem:[%s717_s22 + $0x8] sm:$0xff]  ;;  %v2477_v3 = vld [vmem:[%s717_s22] sm:$0xff]  ;;  %vm782_vm1 = vcmask 261120   ;;  %s3431_s1 = scalar_lea.vmem [#allocation8], %s3133_s7  ;;  %vm1056_vm2 = vcmask 64512   ;;  %vm1184_vm3 = vcmask 1043456   ;;  %s3432_s13 = scalar_lea.vmem %s3384_s5, %s3142_s15 }
  0x50   : > { %792 = vmatpush.bf16.msra.mxu0 %v2478_v2  ;;  %v3196_v7 = vld [vmem:[%s3431_s1] ss:$0 sm:$0xff]  ;;  %vm2088_vm11 = vcmask 523264   ;;  %p2468_p3 = scmp.ne.s32.totalorder %s2915_s16, 1 }
  0x51   : > { %v2632_v49 = vld [vmem:[#allocation6] ss:$0 sm:$0xff] }
  0x54   : > { %v3187_v4 = vld [vmem:[#allocation2] sm:$0xff]  ;;  %793 = vmatpush.bf16.msra.mxu0 %v2477_v3 }
  0x55   : > { %v3189_v5 = vld [vmem:[#allocation2 + $0x8] sm:$0xff] }
  0x56   : > { %v761_v6 = vpack.c.bf16 %v3189_v5, %v3187_v4 }
  0x58   : > { %2416 = vmatmul.msk.bf16.vlgmr.msra.gmra.mxu0 %vm782_vm1, %v761_v6 }
  0xd5   : > { %v795_v8 = vpop.f32.mrf.mxu0 }
  0xd6   : > { %v796_v9 = vadd.f32 %v3196_v7, %v795_v8 }
  0xd8   : > { %v800_v10 = vpack.c.bf16 %v796_v9, %v796_v9 }
  0xda   : > { %802 = vxpose.xlu0.c.b16.start.end [1/1] (short) (narrow) %v800_v10, 96 }
  0xdd   : > { %v797_v50 = vpop.f32.mrf.mxu0 }
  0xde   : > { %v798_v3 = vadd.f32 %v3196_v7, %v797_v50 }
  0xe0   : > { %v801_v6 = vpack.c.bf16 %v798_v3, %v798_v3 }
 0x186   : > { %v810_v11 = vpop.trf.xlu0 }
 0x187   : > { %v824_v12 = vunpack.c.l.b16 %v810_v11  ;;  %v825_v14 = vunpack.c.h.b16 %v810_v11 }
 0x189   : > { %v836_v13 = vpack.c.b16 %v824_v12, %v824_v12  ;;  %v837_v18 = vpack.c.b16 %v825_v14, %v825_v14 }
 0x18b   : > { %860 = vxpose.xlu2.c.b16.start.end [1/1] (short) (narrow) %v836_v13, 16 }
 0x196   : > { %v811_v15 = vpop.trf.xlu0 }
 0x197   : > { %v826_v16 = vunpack.c.l.b16 %v811_v15  ;;  %v827_v17 = vunpack.c.h.b16 %v811_v15 }
 0x199   : > { %v838_v19 = vpack.c.b16 %v826_v16, %v826_v16  ;;  %v839_v20 = vpack.c.b16 %v827_v17, %v827_v17 }
 0x19b   : > { %2591 = vxpose.binary.xlu1.c.b16.start.end [1/2] (short) (narrow) %v838_v19, %v837_v18, 16 }
 0x19c   : > { %908 = vxpose.xlu2.c.b16.start.end [1/1] (short) (narrow) %v839_v20, 16 }
 0x1a6   : > { %v812_v21 = vpop.trf.xlu0 }
 0x1a7   : > { %v828_v22 = vunpack.c.l.b16 %v812_v21  ;;  %v829_v23 = vunpack.c.h.b16 %v812_v21 }
 0x1a9   : > { %v840_v27 = vpack.c.b16 %v828_v22, %v828_v22  ;;  %v841_v30 = vpack.c.b16 %v829_v23, %v829_v23 }
 0x1b6   : > { %v813_v24 = vpop.trf.xlu0 }
 0x1b7   : > { %v830_v25 = vunpack.c.l.b16 %v813_v24  ;;  %v831_v26 = vunpack.c.h.b16 %v813_v24 }
 0x1b9   : > { %v842_v28 = vpack.c.b16 %v830_v25, %v830_v25  ;;  %v843_v29 = vpack.c.b16 %v831_v26, %v831_v26 }
 0x1bb   : > { %2594 = vxpose.binary.xlu1.c.b16.start.end [1/2] (short) (narrow) %v843_v29, %v840_v27, 16 }
 0x1bc   : > { %2588 = vxpose.binary.xlu0.c.b16.start.end [1/2] (short) (narrow) %v842_v28, %v841_v30, 16 }
 0x1c6   : > { %v3199_v31 = vpop.trf.xlu0 }
 0x1c7   : > { %v833_v32 = vunpack.c.h.b16 %v3199_v31  ;;  %v832_v25 = vunpack.c.l.b16 %v3199_v31 }
 0x1c9   : > { %v845_v34 = vpack.c.b16 %v833_v32, %v833_v32  ;;  %v844_v27 = vpack.c.b16 %v832_v25, %v832_v25 }
 0x1d6   : > { %v3202_v33 = vpop.trf.xlu0 }
 0x1d7   : > { %v834_v35 = vunpack.c.l.b16 %v3202_v33  ;;  %v835_v20 = vunpack.c.h.b16 %v3202_v33 }
 0x1d9   : > { %v846_v36 = vpack.c.b16 %v834_v35, %v834_v35  ;;  %v847_v23 = vpack.c.b16 %v835_v20, %v835_v20 }
 0x1db   : > { %2597 = vxpose.binary.xlu2.c.b16.start.end [1/2] (short) (narrow) %v846_v36, %v845_v34, 16 }
 0x22c   : > { %v868_v43 = vpop.trf.xlu2 }
 0x23d   : > { %v916_v48 = vpop.trf.xlu2 }
 0x247   : > { %v2592_v37 = vpop.trf.xlu1 }
 0x24f   : > { %v2593_v38 = vpop.trf.xlu1 }
 0x267   : > { %v2595_v39 = vpop.trf.xlu1 }
 0x268   : > { %v2589_v40 = vpop.trf.xlu0  ;;  %v1061_v41 = vsel %vm1056_vm2, %v2595_v39, 0 }
 0x269   : > { %1070 = vmatpush.bf16.xpose.msra.mxu1 %v1061_v41  ;;  %v1080_v42 = vsel %vm1056_vm2, %v2589_v40, 0 }
 0x26a   : > { %1089 = vmatpush.bf16.xpose.msra.mxu2 %v1080_v42 }
 0x26f   : > { %v2596_v44 = vpop.trf.xlu1 }
 0x270   : > { %v2590_v45 = vpop.trf.xlu0  ;;  %2417 = vmatmul.msk.bf16.vlgmr.msra.gmra.mxu1 %vm1056_vm2, %v868_v43  ;;  %v1118_v46 = vsel %vm1056_vm2, %v2596_v44, 0 }
 0x271   : > { %2418 = vmatmul.msk.bf16.vlgmr.msra.gmra.mxu2 %vm1056_vm2, %v2592_v37  ;;  %v1099_v47 = vsel %vm1056_vm2, %v2590_v45, 0  ;;  %1127 = vmatpush.bf16.xpose.msrb.mxu0 %v1118_v46 }
 0x272   : > { %1108 = vmatpush.bf16.xpose.msra.mxu3 %v1099_v47 }
 0x278   : > { %2420 = vmatmul.msk.bf16.vlgmr.msrb.gmra.mxu0 %vm1056_vm2, %v916_v48 }
 0x279   : > { %2419 = vmatmul.msk.bf16.vlgmr.msra.gmra.mxu3 %vm1056_vm2, %v2593_v38 }
 0x27c   : > { %v2598_v29 = vpop.trf.xlu2 }
 0x27d   : > { %v1205_v30 = vsel %vm1184_vm3, %v2598_v29, 0 }
 0x27e   : > { %1214 = vmatpush.bf16.msrb.mxu2 %v1205_v30 }
 0x284   : > { %v2599_v32 = vpop.trf.xlu2 }
 0x285   : > { %v1224_v33 = vsel %vm1184_vm3, %v2599_v32, 0 }
 0x286   : > { %1233 = vmatpush.bf16.msrb.mxu3 %v1224_v33 }
 0x2ed   : > { %v1072_v51 = vpop.f32.mrf.mxu1 }
 0x2ee   : > { %v3213_v52 = vadd.f32 %v2632_v49, %v1072_v51 }
 0x2f0   : > { %v1133_v53 = vsel %vm1056_vm2, %v3213_v52, -inf }
 0x2f1   : > { %1134 = vmax.xlane.f32.xlu0 %v1133_v53 }
 0x2f4   : > { %v1091_v54 = vpop.f32.mrf.mxu2 }
 0x2f5   : > { %v1092_v55 = vadd.f32 %v2632_v49, %v1091_v54  ;;  %v1074_v56 = vpop.f32.mrf.mxu1  ;;  %v1129_v57 = vpop.f32.mrf.mxu0 }
 0x2f6   : > { %v1130_v59 = vadd.f32 %v2632_v49, %v1129_v57 }
 0x2f7   : > { %v1136_v58 = vsel %vm1056_vm2, %v1092_v55, -inf }
 0x2f8   : > { %1137 = vmax.xlane.f32.xlu1 %v1136_v58  ;;  %v1142_v0 = vsel %vm1056_vm2, %v1130_v59, -inf }
 0x2fc   : > { %v1093_v60 = vpop.f32.mrf.mxu2  ;;  %v1110_v61 = vpop.f32.mrf.mxu3 }
 0x2fd   : > { %v3218_v62 = vadd.f32 %v2632_v49, %v1110_v61  ;;  %v1131_v63 = vpop.f32.mrf.mxu0 }
 0x2ff   : > { %v1139_v1 = vsel %vm1056_vm2, %v3218_v62, -inf }
 0x300   : > { %1143 = vmax.xlane.f32.xlu1 %v1142_v0  ;;  %1140 = vmax.xlane.f32.xlu2 %v1139_v1 }
 0x304   : > { %v1112_v2 = vpop.f32.mrf.mxu3 }
 0x33a   : > { %1354 = vxpose.xlu1.c.b16.start.end [1/1] (short) (narrow) %v801_v6, 96 }
 0x364   : > { %v1135_v39 = vpop.xlane.xlu0 %1134 }
 0x365   : > { %v1145_v40 = vsub.f32 %v3213_v52, %v1135_v39 }
 0x367   : > { %v1149_v41 = vmul.f32 1.442695, %v1145_v40 }
 0x36b   : > { %v1138_v8 = vpop.xlane.xlu1 %1137 }
 0x36c   : > { %v1146_v9 = vsub.f32 %v1092_v55, %v1138_v8 }
 0x36e   : > { %v1151_v10 = vmul.f32 1.442695, %v1146_v9 }
 0x370   : > { %2641 = vpow2.f32 %v1151_v10 }
 0x373   : > { %v1144_v13 = vpop.xlane.xlu1 %1143  ;;  %v1141_v44 = vpop.xlane.xlu2 %1140 }
 0x374   : > { %v1148_v42 = vsub.f32 %v1130_v59, %v1144_v13  ;;  %v1147_v46 = vsub.f32 %v3218_v62, %v1141_v44 }
 0x376   : > { %v2642_v11 = vpop.eup %2641  ;;  %v1155_v43 = vmul.f32 1.442695, %v1148_v42  ;;  %v1153_v48 = vmul.f32 1.442695, %v1147_v46 }
 0x377   : > { %v1160_v12 = vsel %vm1056_vm2, %v2642_v11, 0.0 }
 0x3e6   : > { %v3225_v14 = vpop.trf.xlu1 }
 0x3e7   : > { %v1377_v16 = vunpack.c.h.b16 %v3225_v14  ;;  %v1376_v59 = vunpack.c.l.b16 %v3225_v14 }
 0x3e9   : > { %v1389_v7 = vpack.c.b16 %v1377_v16, %v1377_v16  ;;  %v1388_v61 = vpack.c.b16 %v1376_v59, %v1376_v59 }
 0x3ea   : > { %1161 = vadd.xlane.f32.xlu1 %v1160_v12 }
 0x3f6   : > { %v3227_v15 = vpop.trf.xlu1 }
 0x3f7   : > { %v1378_v53 = vunpack.c.l.b16 %v3227_v15  ;;  %v1379_v3 = vunpack.c.h.b16 %v3227_v15 }
 0x3f9   : > { %v1390_v55 = vpack.c.b16 %v1378_v53, %v1378_v53  ;;  %v1391_v6 = vpack.c.b16 %v1379_v3, %v1379_v3 }
 0x406   : > { %v1364_v17 = vpop.trf.xlu1 }
 0x407   : > { %v1380_v18 = vunpack.c.l.b16 %v1364_v17  ;;  %v1381_v26 = vunpack.c.h.b16 %v1364_v17 }
 0x409   : > { %v1392_v19 = vpack.c.b16 %v1380_v18, %v1380_v18  ;;  %v1393_v28 = vpack.c.b16 %v1381_v26, %v1381_v26 }
 0x40b   : > { %2606 = vxpose.binary.xlu0.c.b16.start.end [1/2] (short) (narrow) %v1392_v19, %v1389_v7, 16 }
 0x416   : > { %v1365_v21 = vpop.trf.xlu1 }
 0x417   : > { %v1382_v22 = vunpack.c.l.b16 %v1365_v21  ;;  %v1383_v54 = vunpack.c.h.b16 %v1365_v21 }
 0x419   : > { %v1394_v24 = vpack.c.b16 %v1382_v22, %v1382_v22  ;;  %v1395_v56 = vpack.c.b16 %v1383_v54, %v1383_v54 }
 0x41b   : > { %2603 = vxpose.binary.xlu2.c.b16.start.end [1/2] (short) (narrow) %v1394_v24, %v847_v23, 16  ;;  %v2633_v24 = vld [vmem:[#allocation6 + $0x1] ss:$0 sm:$0xff] }
 0x424   : > { %2600 = vxpose.binary.xlu1.c.b16.start.end [1/2] (short) (narrow) %v1393_v28, %v844_v27, 16 }
 0x426   : > { %v3233_v34 = vpop.trf.xlu1 }
 0x436   : > { %v3236_v35 = vpop.trf.xlu1 }
 0x45d   : > { %v1162_v36 = vpop.xlane.xlu1 %1161 }
 0x45e   : > { %2643 = vrcp.f32 %v1162_v36 }
 0x45f   : > { %2645 = vpow2.f32 %v1149_v41 }
 0x460   : > { %2647 = vpow2.f32 %v1155_v43 }
 0x461   : > { %2649 = vpow2.f32 %v1153_v48 }
 0x464   : > { %v2644_v31 = vpop.eup %2643 }
 0x465   : > { %v1174_v37 = vmul.f32 %v2644_v31, %v2642_v11  ;;  %v2646_v45 = vpop.eup %2645 }
 0x466   : > { %v1157_v47 = vsel %vm1056_vm2, %v2646_v45, 0.0  ;;  %v2648_v49 = vpop.eup %2647 }
 0x467   : > { %v1178_v38 = vpack.c.bf16 %v1174_v37, %v1174_v37  ;;  %v1166_v50 = vsel %vm1056_vm2, %v2648_v49, 0.0  ;;  %v2650_v51 = vpop.eup %2649 }
 0x468   : > { %v1163_v52 = vsel %vm1056_vm2, %v2650_v51, 0.0 }
 0x469   : > { %2422 = vmatmul.msk.bf16.vlgmr.msrb.gmra.mxu2 %vm1056_vm2, %v1178_v38 }
 0x48c   : > { %1158 = vadd.xlane.f32.xlu2 %v1157_v47 }
 0x494   : > { %1167 = vadd.xlane.f32.xlu2 %v1166_v50 }
 0x49c   : > { %1164 = vadd.xlane.f32.xlu2 %v1163_v52 }
 0x4b7   : > { %v2607_v2 = vpop.trf.xlu0 }
 0x4bc   : > { %v2604_v57 = vpop.trf.xlu2 }
 0x4bd   : > { %v1243_v58 = vsel %vm1184_vm3, %v2604_v57, 0 }
 0x4be   : > { %1252 = vmatpush.bf16.msra.mxu0 %v1243_v58 }
 0x4bf   : > { %v2608_v22 = vpop.trf.xlu0 }
 0x4c0   : > { %v1613_v23 = vsel %vm1056_vm2, %v2608_v22, 0 }
 0x4c4   : > { %v2605_v62 = vpop.trf.xlu2 }
 0x4c5   : > { %2609 = vxpose.binary.xlu2.c.b16.start.end [1/2] (short) (narrow) %v1395_v56, %v1390_v55, 16  ;;  %v1651_v63 = vsel %vm1056_vm2, %v2605_v62, 0 }
 0x4c6   : > { %1660 = vmatpush.bf16.xpose.msra.mxu3 %v1651_v63 }
 0x4d0   : > { %v2601_v60 = vpop.trf.xlu1 }
 0x4d1   : > { %v1186_v8 = vsel %vm1184_vm3, %v2601_v60, 0 }
 0x4d2   : > { %1195 = vmatpush.bf16.msrb.mxu1 %v1186_v8 }
 0x4d5   : > { %1412 = vxpose.xlu2.c.b16.start.end [1/1] (short) (narrow) %v1388_v61, 16 }
 0x4d6   : > { %1622 = vmatpush.bf16.xpose.msra.mxu1 %v1613_v23 }
 0x4d8   : > { %v2602_v0 = vpop.trf.xlu1 }
 0x4d9   : > { %v1632_v1 = vsel %vm1056_vm2, %v2602_v0, 0 }
 0x4da   : > { %1641 = vmatpush.bf16.xpose.msra.mxu2 %v1632_v1 }
 0x4e1   : > { %2426 = vmatmul.msk.bf16.vlgmr.msra.gmra.mxu2 %vm1056_vm2, %v2607_v2 }
 0x4e5   : > { %1460 = vxpose.xlu2.c.b16.start.end [1/1] (short) (narrow) %v1391_v6, 16 }
 0x4ec   : > { %v3252_v9 = vpop.f32.mrf.mxu2 }
 0x4f4   : > { %v1218_v10 = vpop.f32.mrf.mxu2 }
 0x4ff   : > { %v1159_v11 = vpop.xlane.xlu2 %1158 }
 0x500   : > { %2651 = vrcp.f32 %v1159_v11 }
 0x506   : > { %v2652_v12 = vpop.eup %2651 }
 0x507   : > { %v1173_v13 = vmul.f32 %v2652_v12, %v2646_v45  ;;  %v1168_v14 = vpop.xlane.xlu2 %1167 }
 0x508   : > { %2653 = vrcp.f32 %v1168_v14  ;;  %v1384_v14 = vunpack.c.l.b16 %v3233_v34 }
 0x509   : > { %v1177_v16 = vpack.c.bf16 %v1173_v13, %v1173_v13 }
 0x50b   : > { %2421 = vmatmul.msk.bf16.vlgmr.msrb.gmra.mxu1 %vm1056_vm2, %v1177_v16  ;;  %v1385_v16 = vunpack.c.h.b16 %v3233_v34 }
 0x50e   : > { %v2654_v15 = vpop.eup %2653 }
 0x50f   : > { %v1176_v17 = vmul.f32 %v2654_v15, %v2648_v49  ;;  %v1165_v18 = vpop.xlane.xlu2 %1164  ;;  %v1396_v15 = vpack.c.b16 %v1384_v14, %v1384_v14 }
 0x510   : > { %2655 = vrcp.f32 %v1165_v18  ;;  %v1386_v18 = vunpack.c.l.b16 %v3236_v35 }
 0x511   : > { %v1180_v7 = vpack.c.bf16 %v1176_v17, %v1176_v17  ;;  %v1397_v17 = vpack.c.b16 %v1385_v16, %v1385_v16 }
 0x513   : > { %2424 = vmatmul.msk.bf16.vlgmr.msra.gmra.mxu0 %vm1056_vm2, %v1180_v7  ;;  %v1398_v7 = vpack.c.b16 %v1386_v18, %v1386_v18 }
 0x516   : > { %v2656_v19 = vpop.eup %2655 }
 0x517   : > { %v1175_v20 = vmul.f32 %v2656_v19, %v2650_v51  ;;  %v1387_v19 = vunpack.c.h.b16 %v3236_v35 }
 0x519   : > { %v1179_v21 = vpack.c.bf16 %v1175_v20, %v1175_v20  ;;  %v1399_v20 = vpack.c.b16 %v1387_v19, %v1387_v19  ;;  %v2480_v19 = vld [vmem:[%s3155_s18 + $0x8] sm:$0xff] }
 0x51b   : > { %2423 = vmatmul.msk.bf16.vlgmr.msrb.gmra.mxu3 %vm1056_vm2, %v1179_v21  ;;  %v1259_v21 = vpack.c.bf16 %v3252_v9, %v3252_v9 }
 0x564   : > { %v1643_v25 = vpop.f32.mrf.mxu2 }
 0x565   : > { %v1644_v26 = vadd.f32 %v2633_v24, %v1643_v25 }
 0x566   : > { %v2610_v27 = vpop.trf.xlu2 }
 0x567   : > { %2427 = vmatmul.msk.bf16.vlgmr.msra.gmra.mxu3 %vm1056_vm2, %v2610_v27  ;;  %v1688_v28 = vsel %vm1056_vm2, %v1644_v26, -inf }
 0x568   : > { %1689 = vmax.xlane.f32.xlu0 %v1688_v28 }
 0x56c   : > { %v1645_v29 = vpop.f32.mrf.mxu2 }
 0x56e   : > { %v2611_v30 = vpop.trf.xlu2 }
 0x56f   : > { %v1670_v32 = vsel %vm1056_vm2, %v2611_v30, 0 }
 0x570   : > { %1679 = vmatpush.bf16.xpose.msrb.mxu0 %v1670_v32 }
 0x576   : > { %v1420_v33 = vpop.trf.xlu2 }
 0x577   : > { %2425 = vmatmul.msk.bf16.vlgmr.msra.gmra.mxu1 %vm1056_vm2, %v1420_v33 }
 0x586   : > { %v1468_v36 = vpop.trf.xlu2 }
 0x587   : > { %2428 = vmatmul.msk.bf16.vlgmr.msrb.gmra.mxu0 %vm1056_vm2, %v1468_v36 }
 0x588   : > { %v3263_v31 = vpop.f32.mrf.mxu1 }
 0x589   : > { %v1258_v22 = vpack.c.bf16 %v3263_v31, %v3263_v31 }
 0x590   : > { %v1199_v37 = vpop.f32.mrf.mxu1  ;;  %v3265_v38 = vpop.f32.mrf.mxu0 }
 0x591   : > { %v1261_v34 = vpack.c.bf16 %v3265_v38, %v3265_v38 }
 0x598   : > { %v1256_v39 = vpop.f32.mrf.mxu0 }
 0x59e   : > { %v1235_v40 = vpop.f32.mrf.mxu3 }
 0x59f   : > { %v1260_v23 = vpack.c.bf16 %v1235_v40, %v1235_v40 }
 0x5a6   : > { %v1237_v41 = vpop.f32.mrf.mxu3 }
 0x5db   : > { %v1690_v49 = vpop.xlane.xlu0 %1689 }
 0x5dc   : > { %v1698_v51 = vsub.f32 %v1644_v26, %v1690_v49 }
 0x5de   : > { %v1703_v52 = vmul.f32 1.442695, %v1698_v51 }
 0x5e0   : > { %2657 = vpow2.f32 %v1703_v52 }
 0x5e6   : > { %v2658_v56 = vpop.eup %2657 }
 0x5e7   : > { %v1712_v58 = vsel %vm1056_vm2, %v2658_v56, 0.0 }
 0x5ea   : > { %v1662_v42 = vpop.f32.mrf.mxu3 }
 0x5eb   : > { %v1663_v43 = vadd.f32 %v2633_v24, %v1662_v42 }
 0x5ed   : > { %v1691_v44 = vsel %vm1056_vm2, %v1663_v43, -inf }
 0x5ee   : > { %1692 = vmax.xlane.f32.xlu1 %v1691_v44 }
 0x5f2   : > { %v1664_v45 = vpop.f32.mrf.mxu3 }
 0x5f4   : > { %v1624_v46 = vpop.f32.mrf.mxu1 }
 0x5f5   : > { %v1625_v47 = vadd.f32 %v2633_v24, %v1624_v46 }
 0x5f7   : > { %v1685_v48 = vsel %vm1056_vm2, %v1625_v47, -inf }
 0x5f8   : > { %1686 = vmax.xlane.f32.xlu2 %v1685_v48 }
 0x5fc   : > { %v1626_v50 = vpop.f32.mrf.mxu1 }
 0x604   : > { %v1681_v53 = vpop.f32.mrf.mxu0 }
 0x605   : > { %v1682_v54 = vadd.f32 %v2633_v24, %v1681_v53 }
 0x607   : > { %v1694_v55 = vsel %vm1056_vm2, %v1682_v54, -inf }
 0x608   : > { %1695 = vmax.xlane.f32.xlu0 %v1694_v55 }
 0x60c   : > { %v1683_v57 = vpop.f32.mrf.mxu0 }
 0x610   : > { %1713 = vadd.xlane.f32.xlu0 %v1712_v58 }
 0x661   : > { %v1693_v59 = vpop.xlane.xlu1 %1692 }
 0x662   : > { %v1699_v60 = vsub.f32 %v1663_v43, %v1693_v59 }
 0x664   : > { %v1705_v61 = vmul.f32 1.442695, %v1699_v60 }
 0x666   : > { %2659 = vpow2.f32 %v1705_v61 }
 0x66b   : > { %v1687_v62 = vpop.xlane.xlu2 %1686 }
 0x66c   : > { %v2660_v63 = vpop.eup %2659  ;;  %v1697_v0 = vsub.f32 %v1625_v47, %v1687_v62 }
 0x66d   : > { %v1715_v1 = vsel %vm1056_vm2, %v2660_v63, 0.0 }
 0x66e   : > { %v1701_v2 = vmul.f32 1.442695, %v1697_v0  ;;  %1716 = vadd.xlane.f32.xlu1 %v1715_v1 }
 0x670   : > { %2661 = vpow2.f32 %v1701_v2 }
 0x676   : > { %v2662_v3 = vpop.eup %2661 }
 0x677   : > { %v1709_v6 = vsel %vm1056_vm2, %v2662_v3, 0.0 }
 0x678   : > { %1710 = vadd.xlane.f32.xlu2 %v1709_v6 }
 0x67b   : > { %v1696_v8 = vpop.xlane.xlu0 %1695 }
 0x67c   : > { %v1700_v10 = vsub.f32 %v1682_v54, %v1696_v8 }
 0x67e   : > { %v1707_v11 = vmul.f32 1.442695, %v1700_v10 }
 0x680   : > { %2663 = vpow2.f32 %v1707_v11 }
 0x683   : > { %v1714_v24 = vpop.xlane.xlu0 %1713 }
 0x684   : > { %2665 = vrcp.f32 %v1714_v24  ;;  %v2634_v24 = vld [vmem:[%s3432_s13] ss:$0 sm:$0xff] }
 0x686   : > { %v2664_v12 = vpop.eup %2663 }
 0x687   : > { %v1718_v13 = vsel %vm1056_vm2, %v2664_v12, 0.0 }
 0x688   : > { %1719 = vadd.xlane.f32.xlu0 %v1718_v13 }
 0x68a   : > { %v2666_v26 = vpop.eup %2665 }
 0x68b   : > { %v1726_v35 = vmul.f32 %v2666_v26, %v2658_v56 }
 0x68d   : > { %v1730_v9 = vpack.c.bf16 %v1726_v35, %v1726_v35 }
 0x6a1   : > { %2612 = vxpose.binary.xlu2.c.b16.start.end [1/2] (short) (narrow) %v1396_v15, %v1397_v17, 16 }
 0x6a8   : > { %1572 = vxpose.xlu1.c.b16.start.end [1/1] (short) (narrow) %v1398_v7, 16 }
 0x6b1   : > { %1588 = vxpose.xlu0.c.b16.start.end [1/1] (short) (narrow) %v1399_v20, 16  ;;  %v2479_v20 = vld [vmem:[%s3155_s18] sm:$0xff]  ;;  %s3433_s18 = scalar_lea.vmem %s3385_s6, %s3142_s15 }
 0x6c1   : > { %2615 = vxpose.binary.xlu0.c.b16.start.end [1/2] (short) (narrow) %v1259_v21, %v1258_v22, 16 }
 0x6d1   : > { %2624 = vxpose.binary.xlu0.c.b16.start.end [1/2] (short) (narrow) %v1261_v34, %v1260_v23, 16 }
 0x6e1   : > { %v1717_v30 = vpop.xlane.xlu1 %1716 }
 0x6eb   : > { %v1711_v25 = vpop.xlane.xlu2 %1710 }
 0x6ec   : > { %2667 = vrcp.f32 %v1711_v25 }
 0x6ed   : > { %2669 = vrcp.f32 %v1717_v30 }
 0x6f2   : > { %v2668_v29 = vpop.eup %2667 }
 0x6f3   : > { %v1725_v32 = vmul.f32 %v2668_v29, %v2662_v3  ;;  %v2670_v37 = vpop.eup %2669 }
 0x6f4   : > { %v1727_v39 = vmul.f32 %v2670_v37, %v2660_v63 }
 0x6f5   : > { %v1729_v31 = vpack.c.bf16 %v1725_v32, %v1725_v32  ;;  %v2931_v32 = vmov 32.0  }
 0x6f6   : > { %v1731_v42 = vpack.c.bf16 %v1727_v39, %v1727_v39 }
 0x6fb   : > { %v1720_v38 = vpop.xlane.xlu0 %1719 }
 0x6fc   : > { %2671 = vrcp.f32 %v1720_v38 }
 0x6fd   : > { %2673 = vrcp.f32 %v2931_v32 }
 0x702   : > { %v2672_v43 = vpop.eup %2671 }
 0x703   : > { %v1728_v44 = vmul.f32 %v2672_v43, %v2664_v12 }
 0x705   : > { %v1732_v47 = vpack.c.bf16 %v1728_v44, %v1728_v44 }
 0x742   : > { %v2613_v27 = vpop.trf.xlu2 }
 0x743   : > { %v1756_v28 = vsel %vm1184_vm3, %v2613_v27, 0 }
 0x744   : > { %1765 = vmatpush.bf16.msrb.mxu2 %v1756_v28 }
 0x747   : > { %2430 = vmatmul.msk.bf16.vlgmr.msrb.gmra.mxu2 %vm1056_vm2, %v1730_v9 }
 0x74a   : > { %v2614_v33 = vpop.trf.xlu2 }
 0x74b   : > { %v1737_v36 = vsel %vm1184_vm3, %v2614_v33, 0  ;;  %v2674_v33 = vpop.eup %2673 }
 0x74c   : > { %1746 = vmatpush.bf16.msrb.mxu1 %v1737_v36  ;;  %v1957_v36 = vmul.f32 32.0, %v2674_v33  ;;  %vm1961_vm4 = vweird.f32 %v2674_v33 }
 0x74f   : > { %2429 = vmatmul.msk.bf16.vlgmr.msrb.gmra.mxu1 %vm1056_vm2, %v1729_v31  ;;  %v1958_v31 = vsub.f32 1.0, %v1957_v36 }
 0x750   : > { %1938 = vmatpush.bf16.msra.mxu1 %v2480_v19  ;;  %v2485_v19 = vld [vmem:[%s3174_s25 + $0x10] sm:$0xff] }
 0x751   : > { %v1959_v37 = vmul.f32 %v2674_v33, %v1958_v31 }
 0x753   : > { %v1960_v38 = vadd.f32 %v2674_v33, %v1959_v37 }
 0x754   : > { %v1580_v40 = vpop.trf.xlu1  ;;  %1939 = vmatpush.bf16.msra.mxu1 %v2479_v20  ;;  %v2484_v20 = vld [vmem:[%s3174_s25 + $0x8] sm:$0xff] }
 0x755   : > { %v1775_v41 = vsel %vm1184_vm3, %v1580_v40, 0 }
 0x756   : > { %1784 = vmatpush.bf16.msrb.mxu3 %v1775_v41 }
 0x759   : > { %2431 = vmatmul.msk.bf16.vlgmr.msrb.gmra.mxu3 %vm1056_vm2, %v1731_v42 }
 0x75d   : > { %v1596_v45 = vpop.trf.xlu0 }
 0x75e   : > { %v1794_v46 = vsel %vm1184_vm3, %v1596_v45, 0 }
 0x75f   : > { %1803 = vmatpush.bf16.msra.mxu0 %v1794_v46 }
 0x762   : > { %2432 = vmatmul.msk.bf16.vlgmr.msra.gmra.mxu0 %vm1056_vm2, %v1732_v47 }
 0x76d   : > { %v2616_v60 = vpop.trf.xlu0 }
 0x76e   : > { %v1330_v63 = vunpack.c.l.b16 %v2616_v60 }
 0x775   : > { %v2617_v62 = vpop.trf.xlu0 }
 0x776   : > { %v1331_v0 = vunpack.c.l.b16 %v2617_v62 }
 0x778   : > { %v1334_v8 = vpack.c.b16 %v1331_v0, %v1330_v63 }
 0x77d   : > { %v2625_v10 = vpop.trf.xlu0 }
 0x77e   : > { %v1332_v13 = vunpack.c.l.b16 %v2625_v10 }
 0x785   : > { %v2626_v12 = vpop.trf.xlu0 }
 0x786   : > { %v1333_v14 = vunpack.c.l.b16 %v2626_v12  ;;  %v2636_v12 = vld [vmem:[%s619_s24] ss:$0 sm:$0xff] }
 0x788   : > { %v1335_v7 = vpack.c.b16 %v1333_v14, %v1332_v13 }
 0x7ca   : > { %v1767_v48 = vpop.f32.mrf.mxu2 }
 0x7cb   : > { %v1810_v50 = vpack.c.bf16 %v1767_v48, %v1767_v48  ;;  %v2482_v48 = vld [vmem:[%s3164_s3 + $0x8] sm:$0xff] }
 0x7cc   : > { %v1748_v49 = vpop.f32.mrf.mxu1  ;;  %2041 = vmatpush.bf16.msra.mxu2 %v2482_v48 }
 0x7cd   : > { %v1809_v51 = vpack.c.bf16 %v1748_v49, %v1748_v49 }
 0x7cf   : > { %2618 = vxpose.binary.xlu2.c.b16.start.end [1/2] (short) (narrow) %v1810_v50, %v1809_v51, 16 }
 0x7d2   : > { %v1769_v52 = vpop.f32.mrf.mxu2 }
 0x7d3   : > { %v2481_v52 = vld [vmem:[%s3164_s3] sm:$0xff] }
 0x7d4   : > { %v1750_v53 = vpop.f32.mrf.mxu1  ;;  %2042 = vmatpush.bf16.msra.mxu2 %v2481_v52 }
 0x7dc   : > { %v1786_v54 = vpop.f32.mrf.mxu3 }
 0x7dd   : > { %v1811_v56 = vpack.c.bf16 %v1786_v54, %v1786_v54 }
 0x7df   : > { %v1805_v55 = vpop.f32.mrf.mxu0 }
 0x7e0   : > { %v1812_v57 = vpack.c.bf16 %v1805_v55, %v1805_v55 }
 0x7e2   : > { %2621 = vxpose.binary.xlu2.c.b16.start.end [1/2] (short) (narrow) %v1812_v57, %v1811_v56, 16 }
 0x7e4   : > { %v1788_v58 = vpop.f32.mrf.mxu3 }
 0x7e7   : > { %v1807_v59 = vpop.f32.mrf.mxu0 }
 0x870   : > { %v2619_v61 = vpop.trf.xlu2 }
 0x871   : > { %v1881_v2 = vunpack.c.l.b16 %v2619_v61 }
 0x878   : > { %v2620_v1 = vpop.trf.xlu2 }
 0x879   : > { %v1882_v3 = vunpack.c.l.b16 %v2620_v1 }
 0x87b   : > { %v1885_v6 = vpack.c.b16 %v1882_v3, %v1881_v2 }
 0x87d   : > { %2627 = vxpose.binary.xlu1.c.b16.start [1/4] (short) (narrow) %v1334_v8, %v1885_v6, 16  ;;  %v2635_v6 = vld [vmem:[%s3433_s18] ss:$0 sm:$0xff] }
 0x883   : > { %v2622_v11 = vpop.trf.xlu2 }
 0x884   : > { %v1883_v15 = vunpack.c.l.b16 %v2622_v11 }
 0x88b   : > { %v2623_v16 = vpop.trf.xlu2 }
 0x88c   : > { %v1884_v17 = vunpack.c.l.b16 %v2623_v16 }
 0x88e   : > { %v1886_v18 = vpack.c.b16 %v1884_v17, %v1883_v15 }
 0x890   : > { %2628 = vxpose.binary.xlu1.c.b16.end [2/4] (short) (narrow) %v1335_v7, %v1886_v18, 16  ;;  %v2486_v7 = vld [vmem:[%s3174_s25 + $0x18] sm:$0xff] }
 0x891   : > { %2096 = vmatpush.bf16.msra.mxu3 %v2486_v7 }
 0x895   : > { %2097 = vmatpush.bf16.msra.mxu3 %v2485_v19 }
 0x899   : > { %2098 = vmatpush.bf16.msra.mxu3 %v2484_v20 }
 0x92c   : > { %v2629_v21 = vpop.trf.xlu1 }
 0x92d   : > { %v1906_v22 = vrot.slane %v2629_v21, 4  ;;  %v2483_v21 = vld [vmem:[%s3174_s25] sm:$0xff] }
 0x92e   : > { %2099 = vmatpush.bf16.msra.mxu3 %v2483_v21 }
 0x934   : > { %v2630_v34 = vpop.trf.xlu1 }
 0x935   : > { %v1909_v23 = vsel %vm1184_vm3, %v2630_v34, %v1906_v22  ;;  %v2637_v34 = vld [vmem:[%s736_s20] ss:$0 sm:$0xff] }
 0x936   : > { %2441 = vmatmul.msk.bf16.vlgmr.msra.gmra.mxu1 %vm782_vm1, %v1909_v23 }
 0x9b3   : > { %v1941_v25 = vpop.f32.mrf.mxu1 }
 0x9b4   : > { %v1942_v26 = vadd.f32 %v2634_v24, %v1941_v25 }
 0x9b6   : > { %v1946_v35 = vadd.f32 %v1942_v26, %v3187_v4  ;;  %v3305_v4 = vsel %vm1961_vm4, %v2674_v33, %v1960_v38 }
 0x9b8   : > { %v1950_v27 = vsel %vm782_vm1, %v1946_v35, 0.0 }
 0x9b9   : > { %1951 = vadd.xlane.f32.xlu2 %v1950_v27 }
 0x9bb   : > { %v1943_v28 = vpop.f32.mrf.mxu1 }
 0x9bc   : > { %v1944_v9 = vadd.f32 %v2634_v24, %v1943_v28  ;;  %v2638_v28 = vld [vmem:[%s744_s0] ss:$0 sm:$0xff] }
 0x9be   : > { %v1947_v29 = vadd.f32 %v1944_v9, %v3189_v5 }
 0x9c0   : > { %v1953_v30 = vsel %vm782_vm1, %v1947_v29, 0.0 }
 0x9c1   : > { %1954 = vadd.xlane.f32.xlu0 %v1953_v30 }
 0xa2c   : > { %v1952_v39 = vpop.xlane.xlu2 %1951 }
 0xa2d   : > { %v1963_v40 = vmul.f32 %v3305_v4, %v1952_v39 }
 0xa2f   : > { %v1965_v41 = vsub.f32 %v1946_v35, %v1963_v40 }
 0xa31   : > { %v1967_v5 = vmul.f32 %v1965_v41, %v1965_v41 }
 0xa33   : > { %v1969_v42 = vsel %vm782_vm1, %v1967_v5, 0.0 }
 0xa34   : > { %v1955_v43 = vpop.xlane.xlu0 %1954  ;;  %1970 = vadd.xlane.f32.xlu1 %v1969_v42 }
 0xa35   : > { %v1964_v44 = vmul.f32 %v3305_v4, %v1955_v43 }
 0xa37   : > { %v1966_v45 = vsub.f32 %v1947_v29, %v1964_v44 }
 0xa39   : > { %v1968_v46 = vmul.f32 %v1966_v45, %v1966_v45 }
 0xa3b   : > { %v1972_v47 = vsel %vm782_vm1, %v1968_v46, 0.0 }
 0xa3c   : > { %1973 = vadd.xlane.f32.xlu2 %v1972_v47 }
 0xaa7   : > { %v1971_v49 = vpop.xlane.xlu1 %1970 }
 0xaa8   : > { %v1975_v50 = vmul.f32 %v1971_v49, %v3305_v4 }
 0xaaa   : > { %v1977_v51 = vadd.f32 1e-05, %v1975_v50 }
 0xaac   : > { %2675 = vrsqrt.f32 %v1977_v51  ;;  %vm1985_vm6 = vweird.f32 %v1977_v51 }
 0xaaf   : > { %v1974_v53 = vpop.xlane.xlu2 %1973 }
 0xab0   : > { %v1976_v54 = vmul.f32 %v1974_v53, %v3305_v4 }
 0xab2   : > { %v2676_v55 = vpop.eup %2675  ;;  %v1978_v56 = vadd.f32 1e-05, %v1976_v54 }
 0xab3   : > { %v1980_v57 = vmul.f32 %v2676_v55, %v1977_v51  ;;  %vm1986_vm5 = vweird.f32 %v2676_v55 }
 0xab4   : > { %2677 = vrsqrt.f32 %v1978_v56  ;;  %vm1987_vm7 = vmor %vm1985_vm6, %vm1986_vm5  ;;  %vm1995_vm9 = vweird.f32 %v1978_v56 }
 0xab5   : > { %v1981_v58 = vmul.f32 %v2676_v55, %v1980_v57 }
 0xab7   : > { %v1982_v59 = vmul.f32 0.5, %v1981_v58 }
 0xab9   : > { %v1983_v60 = vsub.f32 1.5, %v1982_v59 }
 0xaba   : > { %v2678_v61 = vpop.eup %2677 }
 0xabb   : > { %v1984_v62 = vmul.f32 %v2676_v55, %v1983_v60  ;;  %v1990_v63 = vmul.f32 %v2678_v61, %v1978_v56  ;;  %vm1996_vm8 = vweird.f32 %v2678_v61 }
 0xabc   : > { %vm1997_vm10 = vmor %vm1995_vm9, %vm1996_vm8 }
 0xabd   : > { %v1991_v0 = vmul.f32 %v2678_v61, %v1990_v63  ;;  %v1988_v1 = vsel %vm1987_vm7, %v2676_v55, %v1984_v62  ;;  %v2640_v63 = vld [vmem:[%s628_s11] ss:$0 sm:$0xff] }
 0xabe   : > { %v1999_v8 = vmul.f32 %v1988_v1, %v1965_v41 }
 0xabf   : > { %v1992_v2 = vmul.f32 0.5, %v1991_v0 }
 0xac0   : > { %v2004_v13 = vmul.f32 %v2635_v6, %v1999_v8 }
 0xac1   : > { %v1993_v3 = vsub.f32 1.5, %v1992_v2 }
 0xac2   : > { %v2009_v15 = vadd.f32 %v2636_v12, %v2004_v13 }
 0xac3   : > { %v1994_v10 = vmul.f32 %v2678_v61, %v1993_v3 }
 0xac5   : > { %v1998_v11 = vsel %vm1997_vm10, %v2678_v61, %v1994_v10  ;;  %v2639_v61 = vld [vmem:[%s747_s9] ss:$0 sm:$0xff] }
 0xac6   : > { %v2000_v14 = vmul.f32 %v1998_v11, %v1966_v45 }
 0xac8   : > { %v2005_v16 = vmul.f32 %v2635_v6, %v2000_v14 }
 0xaca   : > { %v2010_v17 = vadd.f32 %v2636_v12, %v2005_v16 }
 0xacc   : > { %v2011_v18 = vpack.c.bf16 %v2010_v17, %v2009_v15 }
 0xace   : > { %2450 = vmatmul.msk.bf16.vlgmr.msra.gmra.mxu2 %vm782_vm1, %v2011_v18 }
 0xb51   : > { %v2044_v22 = vpop.f32.mrf.mxu2 }
 0xb52   : > { %v2045_v23 = vadd.f32 %v2637_v34, %v2044_v22 }
 0xb54   : > { %v2049_v26 = vmax.f32 %v2045_v23, 0.0 }
 0xb59   : > { %v2046_v24 = vpop.f32.mrf.mxu2 }
 0xb5a   : > { %v2047_v25 = vadd.f32 %v2637_v34, %v2046_v24 }
 0xb5c   : > { %v2050_v35 = vmax.f32 %v2047_v25, 0.0 }
 0xb5e   : > { %v2051_v27 = vpack.c.bf16 %v2050_v35, %v2049_v26 }
 0xb60   : > { %2467 = vmatmul.msk.bf16.vlgmr.msra.gmra.mxu3 %vm2088_vm11, %v2051_v27 }
 0xbe3   : > { %v2101_v9 = vpop.f32.mrf.mxu3 }
 0xbe4   : > { %v2102_v29 = vadd.f32 %v2638_v28, %v2101_v9 }
 0xbe6   : > { %v2106_v30 = vadd.f32 %v2102_v29, %v2009_v15 }
 0xbe8   : > { %v2110_v32 = vsel %vm782_vm1, %v2106_v30, 0.0 }
 0xbe9   : > { %2111 = vadd.xlane.f32.xlu1 %v2110_v32 }
 0xbeb   : > { %v2103_v33 = vpop.f32.mrf.mxu3 }
 0xbec   : > { %v2104_v36 = vadd.f32 %v2638_v28, %v2103_v33 }
 0xbee   : > { %v2107_v31 = vadd.f32 %v2104_v36, %v2010_v17 }
 0xbf0   : > { %v2113_v37 = vsel %vm782_vm1, %v2107_v31, 0.0 }
 0xbf1   : > { %2114 = vadd.xlane.f32.xlu0 %v2113_v37 }
 0xc5c   : > { %v2112_v38 = vpop.xlane.xlu1 %2111 }
 0xc5d   : > { %v2116_v39 = vmul.f32 %v2112_v38, %v3305_v4 }
 0xc5f   : > { %v2118_v40 = vsub.f32 %v2106_v30, %v2116_v39 }
 0xc61   : > { %v2120_v41 = vmul.f32 %v2118_v40, %v2118_v40 }
 0xc63   : > { %v2122_v5 = vsel %vm782_vm1, %v2120_v41, 0.0 }
 0xc64   : > { %v2115_v42 = vpop.xlane.xlu0 %2114  ;;  %2123 = vadd.xlane.f32.xlu2 %v2122_v5 }
 0xc65   : > { %v2117_v43 = vmul.f32 %v2115_v42, %v3305_v4 }
 0xc67   : > { %v2119_v44 = vsub.f32 %v2107_v31, %v2117_v43 }
 0xc69   : > { %v2121_v45 = vmul.f32 %v2119_v44, %v2119_v44 }
 0xc6b   : > { %v2125_v46 = vsel %vm782_vm1, %v2121_v45, 0.0 }
 0xc6c   : > { %2126 = vadd.xlane.f32.xlu1 %v2125_v46 }
 0xcd7   : > { %v2124_v47 = vpop.xlane.xlu2 %2123 }
 0xcd8   : > { %v2128_v48 = vmul.f32 %v2124_v47, %v3305_v4 }
 0xcda   : > { %v2130_v49 = vadd.f32 1e-05, %v2128_v48 }
 0xcdc   : > { %2679 = vrsqrt.f32 %v2130_v49  ;;  %vm2138_vm13 = vweird.f32 %v2130_v49 }
 0xcdf   : > { %v2127_v50 = vpop.xlane.xlu1 %2126 }
 0xce0   : > { %v2129_v51 = vmul.f32 %v2127_v50, %v3305_v4 }
 0xce2   : > { %v2680_v52 = vpop.eup %2679  ;;  %v2131_v53 = vadd.f32 1e-05, %v2129_v51 }
 0xce3   : > { %v2133_v54 = vmul.f32 %v2680_v52, %v2130_v49  ;;  %vm2139_vm12 = vweird.f32 %v2680_v52 }
 0xce4   : > { %2681 = vrsqrt.f32 %v2131_v53  ;;  %vm2140_vm14 = vmor %vm2138_vm13, %vm2139_vm12  ;;  %vm2148_vm0 = vweird.f32 %v2131_v53 }
 0xce5   : > { %v2134_v55 = vmul.f32 %v2680_v52, %v2133_v54 }
 0xce7   : > { %v2135_v56 = vmul.f32 0.5, %v2134_v55 }
 0xce9   : > { %v2136_v57 = vsub.f32 1.5, %v2135_v56 }
 0xcea   : > { %v2682_v58 = vpop.eup %2681 }
 0xceb   : > { %v2137_v59 = vmul.f32 %v2680_v52, %v2136_v57  ;;  %v2143_v60 = vmul.f32 %v2682_v58, %v2131_v53  ;;  %vm2149_vm15 = vweird.f32 %v2682_v58 }
 0xcec   : > { %vm2150_vm2 = vmor %vm2148_vm0, %vm2149_vm15 }
 0xced   : > { %v2141_v4 = vsel %vm2140_vm14, %v2680_v52, %v2137_v59  ;;  %v2144_v62 = vmul.f32 %v2682_v58, %v2143_v60 }
 0xcee   : > { %v2152_v0 = vmul.f32 %v2141_v4, %v2118_v40 }
 0xcef   : > { %v2145_v1 = vmul.f32 0.5, %v2144_v62 }
 0xcf0   : > { %v2157_v2 = vmul.f32 %v2639_v61, %v2152_v0 }
 0xcf1   : > { %v2146_v3 = vsub.f32 1.5, %v2145_v1 }
 0xcf2   : > { %v2162_v6 = vadd.f32 %v2640_v63, %v2157_v2 }
 0xcf3   : > { %v2147_v8 = vmul.f32 %v2682_v58, %v2146_v3 }
 0xcf4   : > { %2164 = vst.msk [vmem:[#allocation2] sm:$0xff] %vm782_vm1, %v2162_v6 }
 0xcf5   : > { %v2151_v10 = vsel %vm2150_vm2, %v2682_v58, %v2147_v8 }
 0xcf6   : > { %v2153_v11 = vmul.f32 %v2151_v10, %v2119_v44 }
 0xcf8   : > { %v2158_v12 = vmul.f32 %v2639_v61, %v2153_v11  ;;  %2169 = sbr.rel (%p2468_p3) target bundleno = 3327 (0xcff), region = 104 }
 0xcfa   : > { %v2163_v13 = vadd.f32 %v2640_v63, %v2158_v12 }
 0xcfc   : > { %2165 = vst.msk [vmem:[#allocation2 + $0x8] sm:$0xff] %vm782_vm1, %v2163_v13 }
 0xcfd   : > { %2170 = vst.msk [vmem:[#allocation11] sm:$0xff] %vm782_vm1, %v2162_v6 }
 0xcfe   : > { %2171 = vst.msk [vmem:[#allocation11 + $0x8] sm:$0xff] %vm782_vm1, %v2163_v13 }
 0xcff PF: > { %p2527_p4 = scmp.eq.s32.totalorder %s3039_s19, 1  ;;  %s3437_s25 = sld [smem:[#allocation32_spill]] }
 0xd00   : > { %s2932_s0 = smov [#allocation11]   ;;  %s2933_s9 = smov 128  }
 0xd01   : > { %s2180_s23 = sshll.u32 %s2932_s0, 4  ;;  %s2934_s24 = smov 8   ;;  %s2181_s23 = int_to_ptr.vmem [resolvable:$true] %s2180_s23 }
 0xd05   : > { %s2182_s28 = sshll.u32 %s3437_s25, 4  ;;  %s2183_s28 = int_to_ptr.hbm [resolvable:$true] %s2182_s28 }
 0xd06   : > { %2502 = dma.vmem_to_hbm [thread:$0]  (%p2527_p4), %s2181_s23, 256, %s2183_s28, [#allocation5], %s2933_s9, %s2933_s9, %s2934_s24  }
 0xd07   : > { %2898 = dma.done.wait (%p2527_p4), [#allocation5], 256  }
 0xd08   : > { %2900 = vsyncadd (%p2527_p4), [#allocation5], 4294967040 }
 0xd09 PF: > { %s3438_s16 = sld [smem:[#allocation17_spill]]  ;;  %s3442_s29 = smov %s2907_s30 }
 0xd0a   : > { %s3439_s11 = sld [smem:[#allocation16_spill]] }
 0xd0b   : > { %s3440_s15 = sld [smem:[#allocation19_spill]] }
 0xd0c   : > { %s3441_s19 = sld [smem:[#allocation18_spill]] }
 0xd0f   : > { %s27_s18 = sadd.s32 1, %s3438_s16   ;;  %s3444_s16 = smov %s2919_s17 }
 0xd10   : > { %p24_p5 = scmp.ge.s32.totalorder %s27_s18, 4   ;;  %s3443_s30 = smov %s3439_s11 }
 0xd12   : > { %s3445_s17 = smov %s3441_s19  ;;  %26 = sbr.rel (!%p24_p5) target bundleno = 19 (0x13), region = 181 }
 0xd17   :  { %2199 = vsyncpa [#allocation4], 1 }
 0xd18   :  { %2201 = vsyncpa [#allocation4 + $0x1], 1 }
 0xd19   :  { %2202 = vsyncpa [#allocation7], 1 }
 0xd1a   :  { %2203 = vsyncpa [#allocation5], 1 }
 0xd1b   :  { %2205 = vsyncpa [#allocation5 + $0x1], 1 }

</bundles_post_ra>
